<compile_context>
chip_gen: v6e
topology: v6e:2x2x1
jax: 0.10.0
libtpu: 0.0.40
codegen_flags: <defaults>
</compile_context>

<pallas_src>
import functools

import jax
import jax.numpy as jnp
from jax.experimental import pallas as pl
from jax.experimental.pallas import tpu as pltpu

LN_EPS = 1e-5

# packed parameter order passed to the kernel
PACKED = ("wqkv", "bqkv", "wo", "w1", "b1", "w2", "vecs")


# ----------------------------- Pallas kernel -----------------------------
def _encoder_stack_kernel(x_ref, wqkv_ref, bqkv_ref, wo_ref, w1_ref, b1_ref, w2_ref,
                          vecs_ref, o_ref, *, num_layers, nhead, tb, seq_len, d_model):
    n_rows = tb * seq_len
    head_dim = d_model // nhead

    # Load the activation tile once; it stays in VMEM/vregs across the whole stack.
    x = x_ref[...].reshape(n_rows, d_model).astype(jnp.float32)

    # Weights arrive already in bf16 (cast once in the wrapper, shared across layers &
    # grid steps); biases / LN vectors stay f32.
    wqkv = wqkv_ref[...]          # (D, 3D) bf16, 1/sqrt(head_dim) folded into Q columns
    wo = wo_ref[...]              # (D, D)   bf16
    w1 = w1_ref[...]              # (D, DFF) bf16
    w2 = w2_ref[...]              # (DFF, D) bf16
    bqkv = bqkv_ref[...]          # (1, 3D)  f32 (scale folded into bq part)
    b1 = b1_ref[...]              # (1, DFF) f32
    vecs = vecs_ref[...]          # (6, D)   f32
    ln1_g, ln1_b = vecs[0:1], vecs[1:2]
    ln2_g, ln2_b = vecs[2:3], vecs[3:4]
    bo, b2 = vecs[4:5], vecs[5:6]

    def layer_norm(z, g, b):
        mu = jnp.mean(z, axis=-1, keepdims=True)
        var = jnp.mean((z - mu) ** 2, axis=-1, keepdims=True)
        return (z - mu) * jax.lax.rsqrt(var + LN_EPS) * g + b

    def one_layer(_, x):
        # ---------- Pre-LN #1 + fused-QKV multi-head self-attention + residual ----------
        xn = layer_norm(x, ln1_g, ln1_b)
        qkv = jnp.dot(xn.astype(jnp.bfloat16), wqkv,
                      preferred_element_type=jnp.float32) + bqkv            # (N, 3D) f32
        # Single f32->bf16 cast (MXU consumes q/k/v in bf16 anyway), then split heads.
        qkv = qkv.astype(jnp.bfloat16).reshape(tb, seq_len, 3 * d_model)

        # Fold (head, batch) into one leading batch dim -> a single batched MXU einsum
        # sequence per layer for the score and PV contractions.
        # TODO(synk): a direct (b, s, h, d) -> (b*h, s, d) transpose would avoid the
        #             leading-dim concats, but Mosaic only lowers minor-dim transposes.
        qs, ks, vs = [], [], []
        for h in range(nhead):
            lo = h * head_dim
            qs.append(qkv[:, :, lo:lo + head_dim])
            ks.append(qkv[:, :, d_model + lo:d_model + lo + head_dim])
            vs.append(qkv[:, :, 2 * d_model + lo:2 * d_model + lo + head_dim])
        q = jnp.concatenate(qs, axis=0)          # (nhead*tb, S, hd) bf16
        k = jnp.concatenate(ks, axis=0)          # (nhead*tb, S, hd) bf16
        v = jnp.concatenate(vs, axis=0)          # (nhead*tb, S, hd) bf16

        s = jnp.einsum('bqd,bkd->bqk', q, k,
                       preferred_element_type=jnp.float32)                  # (nh*tb, S, S)
        s = s - jnp.max(s, axis=-1, keepdims=True)
        p = jnp.exp(s)
        p = p * pl.reciprocal(jnp.sum(p, axis=-1, keepdims=True), approx=True)
        ctx = jnp.einsum('bqk,bkd->bqd', p.astype(jnp.bfloat16), v,
                         preferred_element_type=jnp.float32)                # (nh*tb, S, hd)
        ctx = jnp.concatenate([ctx[h * tb:(h + 1) * tb] for h in range(nhead)],
                              axis=-1)                                      # (tb, S, D)
        ctx = ctx.reshape(n_rows, d_model)
        attn = jnp.dot(ctx.astype(jnp.bfloat16), wo,
                       preferred_element_type=jnp.float32) + bo
        x = x + attn

        # ---------- Pre-LN #2 + feed-forward (ReLU) + residual ----------
        xn2 = layer_norm(x, ln2_g, ln2_b)
        h1 = jnp.maximum(jnp.dot(xn2.astype(jnp.bfloat16), w1,
                                 preferred_element_type=jnp.float32) + b1, 0.0)
        ffn = jnp.dot(h1.astype(jnp.bfloat16), w2,
                      preferred_element_type=jnp.float32) + b2
        return x + ffn

    # Full unroll only for shallow stacks: each layer body is thousands of cycles, and
    # deep unrolling just blows up program size / vreg live ranges.
    unroll = num_layers <= 4
    x = jax.lax.fori_loop(0, num_layers, one_layer, x, unroll=unroll)
    o_ref[...] = x.reshape(tb, seq_len, d_model).astype(o_ref.dtype)


# ----------------------------- wrapper helpers -----------------------------
def _pack_params(p, nhead):
    """Fuse QKV weights/biases (with the attention scale folded into Q), cast the MXU
    weights to bf16 once, and pack the small (1, D) vectors into one (6, D) tensor."""
    d_model = p["wq"].shape[0]
    scale = 1.0 / ((d_model // nhead) ** 0.5)
    wqkv = jnp.concatenate([p["wq"] * scale, p["wk"], p["wv"]], axis=1)      # (D, 3D)
    bqkv = jnp.concatenate([p["bq"] * scale, p["bk"], p["bv"]], axis=1)      # (1, 3D)
    return {
        "wqkv": wqkv.astype(jnp.bfloat16),
        "bqkv": bqkv.astype(jnp.float32),
        "wo": p["wo"].astype(jnp.bfloat16),
        "w1": p["w1"].astype(jnp.bfloat16),
        "b1": p["b1"].astype(jnp.float32),
        "w2": p["w2"].astype(jnp.bfloat16),
        "vecs": jnp.concatenate([p["ln1_g"], p["ln1_b"], p["ln2_g"], p["ln2_b"],
                                 p["bo"], p["b2"]], axis=0).astype(jnp.float32),  # (6, D)
    }


def _tpu_layout():
    """(tensorcores per chip, VMEM request cap in bytes) from the attached device kind."""
    try:
        kind = jax.devices()[0].device_kind.lower()
    except Exception:
        kind = ""
    if "7" in kind:                                    # v7x: 2 TCs, 64 MiB/TC -> headroom
        return 2, 52 << 20
    if "lite" in kind or "v5e" in kind or "v6" in kind:
        return 1, 100 << 20                            # v5e / v6e: 1 TC, 128 MiB physical
    if "v4" in kind or "v5" in kind:
        return 2, 100 << 20                            # v4 / v5p megacore: 2 TCs, 128 MiB
    return 1, 48 << 20                                 # unknown: conservative


def _act_bytes(tb, seq, d_model, dim_ff, nhead):
    """Rough per-grid-step activation VMEM footprint (intermediates + I/O tiles)."""
    rows = tb * seq
    return (4 * tb * seq * d_model * 4                 # in/out tiles, double-buffered, f32
            + rows * (3 * d_model + dim_ff) * 6        # qkv / ffn-hidden (f32 + bf16 copies)
            + rows * d_model * 12                      # x / xn / ctx / attn temps (f32)
            + nhead * tb * seq * seq * 8)              # scores + probs (f32)


def _pick_batch_tile(batch, seq, d_model, dim_ff, nhead, num_tc, vmem_cap, weight_bytes):
    """Largest batch tile that fits the VMEM budget. Split the batch across TensorCores
    only on multi-TC chips; on 1-TC chips the grid is a serial loop, so splitting only
    adds per-step overhead and empties the MXU rows."""
    tb = batch if num_tc < 2 else max(1, batch // num_tc)
    while tb > 1 and 2 * weight_bytes + _act_bytes(tb, seq, d_model, dim_ff, nhead) > vmem_cap:
        tb -= 1
    while batch % tb:                                  # keep tb a divisor (no partial blocks)
        tb -= 1
    return tb


def pre_ln_transformer_encoder(src, params, *, num_layers, nhead):
    """Mirrors PreLNTransformerEncoder.forward: the SAME layer (shared weights) applied
    num_layers times, fused into one pallas_call. No final LayerNorm (as in the spec)."""
    B, S, D = src.shape
    assert D % nhead == 0
    packed = _pack_params(params, nhead)
    weights = [packed[k] for k in PACKED]
    weight_bytes = sum(int(w.size) * w.dtype.itemsize for w in weights)
    dim_ff = packed["w1"].shape[1]

    num_tc, vmem_cap = _tpu_layout()
    tb = _pick_batch_tile(B, S, D, dim_ff, nhead, num_tc, vmem_cap, weight_bytes)

    in_specs = [pl.BlockSpec((tb, S, D), lambda b: (b, 0, 0))]
    # Weight specs: constant index_map -> fetched once, resident across all grid steps.
    # TODO(synk): mark these single-buffered (pipeline_mode=pl.Buffered(1)) once confirmed
    #             on all deployed jax versions; reclaims one weight copy of VMEM.
    in_specs += [pl.BlockSpec(w.shape, lambda b: (0, 0)) for w in weights]

    vmem_limit = int(min(2 * weight_bytes + _act_bytes(tb, S, D, dim_ff, nhead)
                         + (16 << 20), vmem_cap))
    # TODO(synk): for d_model/dim_ff too large for the resident-weight budget (notably
    #             v7x's 64 MiB VMEM), stream w1/w2 by tiling dim_ff with a nested
    #             pltpu.emit_pipeline instead of keeping them resident.

    kernel = functools.partial(_encoder_stack_kernel, num_layers=num_layers,
                               nhead=nhead, tb=tb, seq_len=S, d_model=D)
    return pl.pallas_call(
        kernel,
        out_shape=jax.ShapeDtypeStruct((B, S, D), src.dtype),
        grid=(B // tb,),
        in_specs=in_specs,
        out_specs=pl.BlockSpec((tb, S, D), lambda b: (b, 0, 0)),
        compiler_params=pltpu.CompilerParams(
            dimension_semantics=("parallel",),
            vmem_limit_bytes=vmem_limit,
        ),
    )(src, *weights)


# ------------------------- pure-JAX f32 reference -------------------------
def _layer_ref(x, p, nhead):
    d = x.shape[-1]
    hd = d // nhead
    scale = 1.0 / (hd ** 0.5)

    def ln(z, g, b):
        mu = jnp.mean(z, axis=-1, keepdims=True)
        var = jnp.mean((z - mu) ** 2, axis=-1, keepdims=True)
        return (z - mu) * jax.lax.rsqrt(var + LN_EPS) * g[0] + b[0]

    xn = ln(x, p["ln1_g"], p["ln1_b"])
    q = xn @ p["wq"] + p["bq"][0]
    k = xn @ p["wk"] + p["bk"][0]
    v = xn @ p["wv"] + p["bv"][0]
    outs = []
    for h in range(nhead):
        sl = slice(h * hd, (h + 1) * hd)
        s = (q[..., sl] @ jnp.swapaxes(k[..., sl], -1, -2)) * scale
        s = s - jnp.max(s, axis=-1, keepdims=True)
        pr = jnp.exp(s)
        pr = pr / jnp.sum(pr, axis=-1, keepdims=True)
        outs.append(pr @ v[..., sl])
    attn = jnp.concatenate(outs, axis=-1) @ p["wo"] + p["bo"][0]
    x = x + attn
    xn2 = ln(x, p["ln2_g"], p["ln2_b"])
    h1 = jnp.maximum(xn2 @ p["w1"] + p["b1"][0], 0.0)
    return x + (h1 @ p["w2"] + p["b2"][0])


def _encoder_ref(x, p, num_layers, nhead):
    for _ in range(num_layers):
        x = _layer_ref(x, p, nhead)
    return x


def init_params(key, d_model, dim_ff):
    ks = jax.random.split(key, 8)
    std = 0.02
    return {
        "ln1_g": jnp.ones((1, d_model), jnp.float32),
        "ln1_b": jnp.zeros((1, d_model), jnp.float32),
        "wq": std * jax.random.normal(ks[0], (d_model, d_model), jnp.float32),
        "bq": jnp.zeros((1, d_model), jnp.float32),
        "wk": std * jax.random.normal(ks[1], (d_model, d_model), jnp.float32),
        "bk": jnp.zeros((1, d_model), jnp.float32),
        "wv": std * jax.random.normal(ks[2], (d_model, d_model), jnp.float32),
        "bv": jnp.zeros((1, d_model), jnp.float32),
        "wo": std * jax.random.normal(ks[3], (d_model, d_model), jnp.float32),
        "bo": std * jax.random.normal(ks[4], (1, d_model), jnp.float32),
        "ln2_g": jnp.ones((1, d_model), jnp.float32),
        "ln2_b": jnp.zeros((1, d_model), jnp.float32),
        "w1": std * jax.random.normal(ks[5], (d_model, dim_ff), jnp.float32),
        "b1": std * jax.random.normal(ks[6], (1, dim_ff), jnp.float32),
        "w2": std * jax.random.normal(ks[7], (dim_ff, d_model), jnp.float32),
        "b2": jnp.zeros((1, d_model), jnp.float32),
    }


if __name__ == "__main__":
    B, S, D = 2, 8, 128          # batch, seq, d_model (lane-dense: D % 128 == 0)
    NHEAD, DFF = 4, 256
    NUM_LAYERS = 2

    root = jax.random.PRNGKey(0)
    k_x, k_p = jax.random.split(root)
    src = jax.random.normal(k_x, (B, S, D), jnp.float32)
    params = init_params(k_p, D, DFF)

    out = pre_ln_transformer_encoder(src, params, num_layers=NUM_LAYERS, nhead=NHEAD)
    out = jax.block_until_ready(out)

    ref = _encoder_ref(src, params, NUM_LAYERS, NHEAD)
    assert out.shape == (B, S, D) and out.dtype == jnp.float32
    # bf16 MXU operands (with the scale pre-folded into Q) + approx-reciprocal softmax ->
    # compare against the f32 reference with a correspondingly looser tolerance.
    assert jnp.allclose(out, ref, rtol=2e-2, atol=2e-2), "mismatch vs reference"

    print("KERNEL_OK")
</pallas_src>

<mosaic_0001>
module attributes {stable_mosaic.version = 11 : i64} {
  func.func @_encoder_stack_kernel(%arg0: i32, %arg1: memref<2x8x128xf32, #tpu.memory_space<vmem>>, %arg2: memref<128x384xbf16, #tpu.memory_space<vmem>>, %arg3: memref<1x384xf32, #tpu.memory_space<vmem>>, %arg4: memref<128x128xbf16, #tpu.memory_space<vmem>>, %arg5: memref<128x256xbf16, #tpu.memory_space<vmem>>, %arg6: memref<1x256xf32, #tpu.memory_space<vmem>>, %arg7: memref<256x128xbf16, #tpu.memory_space<vmem>>, %arg8: memref<6x128xf32, #tpu.memory_space<vmem>>, %arg9: memref<2x8x128xf32, #tpu.memory_space<vmem>>) attributes {dimension_semantics = [#tpu.dimension_semantics<parallel>], iteration_bounds = array<i64: 1>, scalar_prefetch = 0 : i64, scratch_operands = 0 : i64, tpu.core_type = #tpu.core_type<tc>, window_params = [{transform_indices = @transform_0, window_bounds = array<i64: 2, 8, 128>}, {pipeline_mode = #tpu.pipeline_mode<synchronous>, transform_indices = @transform_1, window_bounds = array<i64: 128, 384>}, {pipeline_mode = #tpu.pipeline_mode<synchronous>, transform_indices = @transform_2, window_bounds = array<i64: 1, 384>}, {pipeline_mode = #tpu.pipeline_mode<synchronous>, transform_indices = @transform_3, window_bounds = array<i64: 128, 128>}, {pipeline_mode = #tpu.pipeline_mode<synchronous>, transform_indices = @transform_4, window_bounds = array<i64: 128, 256>}, {pipeline_mode = #tpu.pipeline_mode<synchronous>, transform_indices = @transform_5, window_bounds = array<i64: 1, 256>}, {pipeline_mode = #tpu.pipeline_mode<synchronous>, transform_indices = @transform_6, window_bounds = array<i64: 256, 128>}, {pipeline_mode = #tpu.pipeline_mode<synchronous>, transform_indices = @transform_7, window_bounds = array<i64: 6, 128>}, {transform_indices = @transform_8, window_bounds = array<i64: 2, 8, 128>}]} {
    %c0 = arith.constant 0 : index
    %c0_0 = arith.constant 0 : index
    %c0_1 = arith.constant 0 : index
    %0 = vector.load %arg1[%c0, %c0_0, %c0_1] : memref<2x8x128xf32, #tpu.memory_space<vmem>>, vector<2x8x128xf32>
    %1 = vector.shape_cast %0 : vector<2x8x128xf32> to vector<16x128xf32>
    %c0_2 = arith.constant 0 : index
    %c0_3 = arith.constant 0 : index
    %2 = vector.load %arg2[%c0_2, %c0_3] : memref<128x384xbf16, #tpu.memory_space<vmem>>, vector<128x384xbf16>
    %c0_4 = arith.constant 0 : index
    %c0_5 = arith.constant 0 : index
    %3 = vector.load %arg4[%c0_4, %c0_5] : memref<128x128xbf16, #tpu.memory_space<vmem>>, vector<128x128xbf16>
    %c0_6 = arith.constant 0 : index
    %c0_7 = arith.constant 0 : index
    %4 = vector.load %arg5[%c0_6, %c0_7] : memref<128x256xbf16, #tpu.memory_space<vmem>>, vector<128x256xbf16>
    %c0_8 = arith.constant 0 : index
    %c0_9 = arith.constant 0 : index
    %5 = vector.load %arg7[%c0_8, %c0_9] : memref<256x128xbf16, #tpu.memory_space<vmem>>, vector<256x128xbf16>
    %c0_10 = arith.constant 0 : index
    %c0_11 = arith.constant 0 : index
    %6 = vector.load %arg3[%c0_10, %c0_11] : memref<1x384xf32, #tpu.memory_space<vmem>>, vector<1x384xf32>
    %c0_12 = arith.constant 0 : index
    %c0_13 = arith.constant 0 : index
    %7 = vector.load %arg6[%c0_12, %c0_13] : memref<1x256xf32, #tpu.memory_space<vmem>>, vector<1x256xf32>
    %c0_14 = arith.constant 0 : index
    %c0_15 = arith.constant 0 : index
    %8 = vector.load %arg8[%c0_14, %c0_15] : memref<6x128xf32, #tpu.memory_space<vmem>>, vector<6x128xf32>
    %9 = vector.extract_strided_slice %8 {offsets = [0, 0], sizes = [1, 128], strides = [1, 1]} : vector<6x128xf32> to vector<1x128xf32>
    %10 = vector.extract_strided_slice %8 {offsets = [1, 0], sizes = [1, 128], strides = [1, 1]} : vector<6x128xf32> to vector<1x128xf32>
    %11 = vector.extract_strided_slice %8 {offsets = [2, 0], sizes = [1, 128], strides = [1, 1]} : vector<6x128xf32> to vector<1x128xf32>
    %12 = vector.extract_strided_slice %8 {offsets = [3, 0], sizes = [1, 128], strides = [1, 1]} : vector<6x128xf32> to vector<1x128xf32>
    %13 = vector.extract_strided_slice %8 {offsets = [4, 0], sizes = [1, 128], strides = [1, 1]} : vector<6x128xf32> to vector<1x128xf32>
    %14 = vector.extract_strided_slice %8 {offsets = [5, 0], sizes = [1, 128], strides = [1, 1]} : vector<6x128xf32> to vector<1x128xf32>
    %c0_i32 = arith.constant 0 : i32
    %cst = arith.constant dense<0.000000e+00> : vector<16xf32>
    %15 = vector.multi_reduction <add>, %1, %cst [1] : vector<16x128xf32> to vector<16xf32>
    %16 = vector.shape_cast %15 : vector<16xf32> to vector<16x1xf32>
    %cst_16 = arith.constant 1.280000e+02 : f32
    %17 = vector.broadcast %cst_16 : f32 to vector<16x1xf32>
    %18 = arith.divf %16, %17 : vector<16x1xf32>
    %19 = vector.broadcast %18 : vector<16x1xf32> to vector<16x128xf32>
    %20 = arith.subf %1, %19 : vector<16x128xf32>
    %21 = arith.mulf %20, %20 : vector<16x128xf32>
    %cst_17 = arith.constant dense<0.000000e+00> : vector<16xf32>
    %22 = vector.multi_reduction <add>, %21, %cst_17 [1] : vector<16x128xf32> to vector<16xf32>
    %23 = vector.shape_cast %22 : vector<16xf32> to vector<16x1xf32>
    %cst_18 = arith.constant 1.280000e+02 : f32
    %24 = vector.broadcast %cst_18 : f32 to vector<16x1xf32>
    %25 = arith.divf %23, %24 : vector<16x1xf32>
    %26 = vector.broadcast %18 : vector<16x1xf32> to vector<16x128xf32>
    %27 = arith.subf %1, %26 : vector<16x128xf32>
    %cst_19 = arith.constant 9.99999974E-6 : f32
    %28 = vector.broadcast %cst_19 : f32 to vector<16x1xf32>
    %29 = arith.addf %25, %28 : vector<16x1xf32>
    %30 = math.rsqrt %29 : vector<16x1xf32>
    %31 = vector.broadcast %30 : vector<16x1xf32> to vector<16x128xf32>
    %32 = arith.mulf %27, %31 : vector<16x128xf32>
    %33 = vector.broadcast %9 : vector<1x128xf32> to vector<16x128xf32>
    %34 = arith.mulf %32, %33 : vector<16x128xf32>
    %35 = vector.broadcast %10 : vector<1x128xf32> to vector<16x128xf32>
    %36 = arith.addf %34, %35 : vector<16x128xf32>
    %37 = arith.truncf %36 : vector<16x128xf32> to vector<16x128xbf16>
    %cst_20 = arith.constant dense<0.000000e+00> : vector<16x384xf32>
    %38 = tpu.matmul %37, %2, %cst_20 {dimension_numbers = #tpu.dot_dimension_numbers<[1], [0], [0], [1], [0, 0, 1, 1], [], []>} : vector<16x128xbf16>, vector<128x384xbf16>, vector<16x384xf32> -> vector<16x384xf32>
    %39 = vector.broadcast %6 : vector<1x384xf32> to vector<16x384xf32>
    %40 = arith.addf %38, %39 : vector<16x384xf32>
    %41 = arith.truncf %40 : vector<16x384xf32> to vector<16x384xbf16>
    %42 = vector.shape_cast %41 : vector<16x384xbf16> to vector<2x8x384xbf16>
    %43 = vector.extract_strided_slice %42 {offsets = [0, 0, 0], sizes = [2, 8, 32], strides = [1, 1, 1]} : vector<2x8x384xbf16> to vector<2x8x32xbf16>
    %44 = vector.extract_strided_slice %42 {offsets = [0, 0, 128], sizes = [2, 8, 32], strides = [1, 1, 1]} : vector<2x8x384xbf16> to vector<2x8x32xbf16>
    %45 = vector.extract_strided_slice %42 {offsets = [0, 0, 256], sizes = [2, 8, 32], strides = [1, 1, 1]} : vector<2x8x384xbf16> to vector<2x8x32xbf16>
    %46 = vector.extract_strided_slice %42 {offsets = [0, 0, 32], sizes = [2, 8, 32], strides = [1, 1, 1]} : vector<2x8x384xbf16> to vector<2x8x32xbf16>
    %47 = vector.extract_strided_slice %42 {offsets = [0, 0, 160], sizes = [2, 8, 32], strides = [1, 1, 1]} : vector<2x8x384xbf16> to vector<2x8x32xbf16>
    %48 = vector.extract_strided_slice %42 {offsets = [0, 0, 288], sizes = [2, 8, 32], strides = [1, 1, 1]} : vector<2x8x384xbf16> to vector<2x8x32xbf16>
    %49 = vector.extract_strided_slice %42 {offsets = [0, 0, 64], sizes = [2, 8, 32], strides = [1, 1, 1]} : vector<2x8x384xbf16> to vector<2x8x32xbf16>
    %50 = vector.extract_strided_slice %42 {offsets = [0, 0, 192], sizes = [2, 8, 32], strides = [1, 1, 1]} : vector<2x8x384xbf16> to vector<2x8x32xbf16>
    %51 = vector.extract_strided_slice %42 {offsets = [0, 0, 320], sizes = [2, 8, 32], strides = [1, 1, 1]} : vector<2x8x384xbf16> to vector<2x8x32xbf16>
    %52 = vector.extract_strided_slice %42 {offsets = [0, 0, 96], sizes = [2, 8, 32], strides = [1, 1, 1]} : vector<2x8x384xbf16> to vector<2x8x32xbf16>
    %53 = vector.extract_strided_slice %42 {offsets = [0, 0, 224], sizes = [2, 8, 32], strides = [1, 1, 1]} : vector<2x8x384xbf16> to vector<2x8x32xbf16>
    %54 = vector.extract_strided_slice %42 {offsets = [0, 0, 352], sizes = [2, 8, 32], strides = [1, 1, 1]} : vector<2x8x384xbf16> to vector<2x8x32xbf16>
    %55 = tpu.concatenate %43, %46, %49, %52 in 0 : vector<2x8x32xbf16>, vector<2x8x32xbf16>, vector<2x8x32xbf16>, vector<2x8x32xbf16> -> vector<8x8x32xbf16>
    %56 = tpu.concatenate %44, %47, %50, %53 in 0 : vector<2x8x32xbf16>, vector<2x8x32xbf16>, vector<2x8x32xbf16>, vector<2x8x32xbf16> -> vector<8x8x32xbf16>
    %57 = tpu.concatenate %45, %48, %51, %54 in 0 : vector<2x8x32xbf16>, vector<2x8x32xbf16>, vector<2x8x32xbf16>, vector<2x8x32xbf16> -> vector<8x8x32xbf16>
    "tpu.trace_start"() <{level = 10 : i32, message = "bqd,bkd->bqk"}> : () -> ()
    %cst_21 = arith.constant dense<0.000000e+00> : vector<8x8x8xf32>
    %58 = tpu.matmul %55, %56, %cst_21 {dimension_numbers = #tpu.dot_dimension_numbers<[2], [2], [1], [1], [0, 0, 0, 1, 1, 1], [0], [0]>} : vector<8x8x32xbf16>, vector<8x8x32xbf16>, vector<8x8x8xf32> -> vector<8x8x8xf32>
    "tpu.trace_stop"() : () -> ()
    %cst_22 = arith.constant dense<0xFF800000> : vector<8x8xf32>
    %59 = vector.multi_reduction <maximumf>, %58, %cst_22 [2] : vector<8x8x8xf32> to vector<8x8xf32>
    %60 = vector.shape_cast %59 : vector<8x8xf32> to vector<8x8x1xf32>
    %61 = vector.broadcast %60 : vector<8x8x1xf32> to vector<8x8x8xf32>
    %62 = arith.subf %58, %61 : vector<8x8x8xf32>
    %63 = math.exp %62 : vector<8x8x8xf32>
    %cst_23 = arith.constant dense<0.000000e+00> : vector<8x8xf32>
    %64 = vector.multi_reduction <add>, %63, %cst_23 [2] : vector<8x8x8xf32> to vector<8x8xf32>
    %65 = vector.shape_cast %64 : vector<8x8xf32> to vector<8x8x1xf32>
    %66 = tpu.reciprocal %65 {approx = true} : vector<8x8x1xf32> -> vector<8x8x1xf32>
    %67 = vector.broadcast %66 : vector<8x8x1xf32> to vector<8x8x8xf32>
    %68 = arith.mulf %63, %67 : vector<8x8x8xf32>
    %69 = arith.truncf %68 : vector<8x8x8xf32> to vector<8x8x8xbf16>
    "tpu.trace_start"() <{level = 10 : i32, message = "bqk,bkd->bqd"}> : () -> ()
    %cst_24 = arith.constant dense<0.000000e+00> : vector<8x8x32xf32>
    %70 = tpu.matmul %69, %57, %cst_24 {dimension_numbers = #tpu.dot_dimension_numbers<[2], [1], [1], [2], [0, 0, 0, 1, 1, 2], [0], [0]>} : vector<8x8x8xbf16>, vector<8x8x32xbf16>, vector<8x8x32xf32> -> vector<8x8x32xf32>
    "tpu.trace_stop"() : () -> ()
    %71 = vector.extract_strided_slice %70 {offsets = [0, 0, 0], sizes = [2, 8, 32], strides = [1, 1, 1]} : vector<8x8x32xf32> to vector<2x8x32xf32>
    %72 = vector.extract_strided_slice %70 {offsets = [2, 0, 0], sizes = [2, 8, 32], strides = [1, 1, 1]} : vector<8x8x32xf32> to vector<2x8x32xf32>
    %73 = vector.extract_strided_slice %70 {offsets = [4, 0, 0], sizes = [2, 8, 32], strides = [1, 1, 1]} : vector<8x8x32xf32> to vector<2x8x32xf32>
    %74 = vector.extract_strided_slice %70 {offsets = [6, 0, 0], sizes = [2, 8, 32], strides = [1, 1, 1]} : vector<8x8x32xf32> to vector<2x8x32xf32>
    %75 = tpu.concatenate %71, %72, %73, %74 in 2 : vector<2x8x32xf32>, vector<2x8x32xf32>, vector<2x8x32xf32>, vector<2x8x32xf32> -> vector<2x8x128xf32>
    %76 = vector.shape_cast %75 : vector<2x8x128xf32> to vector<16x128xf32>
    %77 = arith.truncf %76 : vector<16x128xf32> to vector<16x128xbf16>
    %cst_25 = arith.constant dense<0.000000e+00> : vector<16x128xf32>
    %78 = tpu.matmul %77, %3, %cst_25 {dimension_numbers = #tpu.dot_dimension_numbers<[1], [0], [0], [1], [0, 0, 1, 1], [], []>} : vector<16x128xbf16>, vector<128x128xbf16>, vector<16x128xf32> -> vector<16x128xf32>
    %79 = vector.broadcast %13 : vector<1x128xf32> to vector<16x128xf32>
    %80 = arith.addf %78, %79 : vector<16x128xf32>
    %81 = arith.addf %1, %80 : vector<16x128xf32>
    %cst_26 = arith.constant dense<0.000000e+00> : vector<16xf32>
    %82 = vector.multi_reduction <add>, %81, %cst_26 [1] : vector<16x128xf32> to vector<16xf32>
    %83 = vector.shape_cast %82 : vector<16xf32> to vector<16x1xf32>
    %cst_27 = arith.constant 1.280000e+02 : f32
    %84 = vector.broadcast %cst_27 : f32 to vector<16x1xf32>
    %85 = arith.divf %83, %84 : vector<16x1xf32>
    %86 = vector.broadcast %85 : vector<16x1xf32> to vector<16x128xf32>
    %87 = arith.subf %81, %86 : vector<16x128xf32>
    %88 = arith.mulf %87, %87 : vector<16x128xf32>
    %cst_28 = arith.constant dense<0.000000e+00> : vector<16xf32>
    %89 = vector.multi_reduction <add>, %88, %cst_28 [1] : vector<16x128xf32> to vector<16xf32>
    %90 = vector.shape_cast %89 : vector<16xf32> to vector<16x1xf32>
    %cst_29 = arith.constant 1.280000e+02 : f32
    %91 = vector.broadcast %cst_29 : f32 to vector<16x1xf32>
    %92 = arith.divf %90, %91 : vector<16x1xf32>
    %93 = vector.broadcast %85 : vector<16x1xf32> to vector<16x128xf32>
    %94 = arith.subf %81, %93 : vector<16x128xf32>
    %cst_30 = arith.constant 9.99999974E-6 : f32
    %95 = vector.broadcast %cst_30 : f32 to vector<16x1xf32>
    %96 = arith.addf %92, %95 : vector<16x1xf32>
    %97 = math.rsqrt %96 : vector<16x1xf32>
    %98 = vector.broadcast %97 : vector<16x1xf32> to vector<16x128xf32>
    %99 = arith.mulf %94, %98 : vector<16x128xf32>
    %100 = vector.broadcast %11 : vector<1x128xf32> to vector<16x128xf32>
    %101 = arith.mulf %99, %100 : vector<16x128xf32>
    %102 = vector.broadcast %12 : vector<1x128xf32> to vector<16x128xf32>
    %103 = arith.addf %101, %102 : vector<16x128xf32>
    %104 = arith.truncf %103 : vector<16x128xf32> to vector<16x128xbf16>
    %cst_31 = arith.constant dense<0.000000e+00> : vector<16x256xf32>
    %105 = tpu.matmul %104, %4, %cst_31 {dimension_numbers = #tpu.dot_dimension_numbers<[1], [0], [0], [1], [0, 0, 1, 1], [], []>} : vector<16x128xbf16>, vector<128x256xbf16>, vector<16x256xf32> -> vector<16x256xf32>
    %106 = vector.broadcast %7 : vector<1x256xf32> to vector<16x256xf32>
    %107 = arith.addf %105, %106 : vector<16x256xf32>
    %cst_32 = arith.constant 0.000000e+00 : f32
    %108 = vector.broadcast %cst_32 : f32 to vector<16x256xf32>
    %109 = arith.maximumf %107, %108 : vector<16x256xf32>
    %110 = arith.truncf %109 : vector<16x256xf32> to vector<16x256xbf16>
    %cst_33 = arith.constant dense<0.000000e+00> : vector<16x128xf32>
    %111 = tpu.matmul %110, %5, %cst_33 {dimension_numbers = #tpu.dot_dimension_numbers<[1], [0], [0], [1], [0, 0, 1, 1], [], []>} : vector<16x256xbf16>, vector<256x128xbf16>, vector<16x128xf32> -> vector<16x128xf32>
    %112 = vector.broadcast %14 : vector<1x128xf32> to vector<16x128xf32>
    %113 = arith.addf %111, %112 : vector<16x128xf32>
    %114 = arith.addf %81, %113 : vector<16x128xf32>
    %c1_i32 = arith.constant 1 : i32
    %cst_34 = arith.constant dense<0.000000e+00> : vector<16xf32>
    %115 = vector.multi_reduction <add>, %114, %cst_34 [1] : vector<16x128xf32> to vector<16xf32>
    %116 = vector.shape_cast %115 : vector<16xf32> to vector<16x1xf32>
    %cst_35 = arith.constant 1.280000e+02 : f32
    %117 = vector.broadcast %cst_35 : f32 to vector<16x1xf32>
    %118 = arith.divf %116, %117 : vector<16x1xf32>
    %119 = vector.broadcast %118 : vector<16x1xf32> to vector<16x128xf32>
    %120 = arith.subf %114, %119 : vector<16x128xf32>
    %121 = arith.mulf %120, %120 : vector<16x128xf32>
    %cst_36 = arith.constant dense<0.000000e+00> : vector<16xf32>
    %122 = vector.multi_reduction <add>, %121, %cst_36 [1] : vector<16x128xf32> to vector<16xf32>
    %123 = vector.shape_cast %122 : vector<16xf32> to vector<16x1xf32>
    %cst_37 = arith.constant 1.280000e+02 : f32
    %124 = vector.broadcast %cst_37 : f32 to vector<16x1xf32>
    %125 = arith.divf %123, %124 : vector<16x1xf32>
    %126 = vector.broadcast %118 : vector<16x1xf32> to vector<16x128xf32>
    %127 = arith.subf %114, %126 : vector<16x128xf32>
    %cst_38 = arith.constant 9.99999974E-6 : f32
    %128 = vector.broadcast %cst_38 : f32 to vector<16x1xf32>
    %129 = arith.addf %125, %128 : vector<16x1xf32>
    %130 = math.rsqrt %129 : vector<16x1xf32>
    %131 = vector.broadcast %130 : vector<16x1xf32> to vector<16x128xf32>
    %132 = arith.mulf %127, %131 : vector<16x128xf32>
    %133 = vector.broadcast %9 : vector<1x128xf32> to vector<16x128xf32>
    %134 = arith.mulf %132, %133 : vector<16x128xf32>
    %135 = vector.broadcast %10 : vector<1x128xf32> to vector<16x128xf32>
    %136 = arith.addf %134, %135 : vector<16x128xf32>
    %137 = arith.truncf %136 : vector<16x128xf32> to vector<16x128xbf16>
    %cst_39 = arith.constant dense<0.000000e+00> : vector<16x384xf32>
    %138 = tpu.matmul %137, %2, %cst_39 {dimension_numbers = #tpu.dot_dimension_numbers<[1], [0], [0], [1], [0, 0, 1, 1], [], []>} : vector<16x128xbf16>, vector<128x384xbf16>, vector<16x384xf32> -> vector<16x384xf32>
    %139 = vector.broadcast %6 : vector<1x384xf32> to vector<16x384xf32>
    %140 = arith.addf %138, %139 : vector<16x384xf32>
    %141 = arith.truncf %140 : vector<16x384xf32> to vector<16x384xbf16>
    %142 = vector.shape_cast %141 : vector<16x384xbf16> to vector<2x8x384xbf16>
    %143 = vector.extract_strided_slice %142 {offsets = [0, 0, 0], sizes = [2, 8, 32], strides = [1, 1, 1]} : vector<2x8x384xbf16> to vector<2x8x32xbf16>
    %144 = vector.extract_strided_slice %142 {offsets = [0, 0, 128], sizes = [2, 8, 32], strides = [1, 1, 1]} : vector<2x8x384xbf16> to vector<2x8x32xbf16>
    %145 = vector.extract_strided_slice %142 {offsets = [0, 0, 256], sizes = [2, 8, 32], strides = [1, 1, 1]} : vector<2x8x384xbf16> to vector<2x8x32xbf16>
    %146 = vector.extract_strided_slice %142 {offsets = [0, 0, 32], sizes = [2, 8, 32], strides = [1, 1, 1]} : vector<2x8x384xbf16> to vector<2x8x32xbf16>
    %147 = vector.extract_strided_slice %142 {offsets = [0, 0, 160], sizes = [2, 8, 32], strides = [1, 1, 1]} : vector<2x8x384xbf16> to vector<2x8x32xbf16>
    %148 = vector.extract_strided_slice %142 {offsets = [0, 0, 288], sizes = [2, 8, 32], strides = [1, 1, 1]} : vector<2x8x384xbf16> to vector<2x8x32xbf16>
    %149 = vector.extract_strided_slice %142 {offsets = [0, 0, 64], sizes = [2, 8, 32], strides = [1, 1, 1]} : vector<2x8x384xbf16> to vector<2x8x32xbf16>
    %150 = vector.extract_strided_slice %142 {offsets = [0, 0, 192], sizes = [2, 8, 32], strides = [1, 1, 1]} : vector<2x8x384xbf16> to vector<2x8x32xbf16>
    %151 = vector.extract_strided_slice %142 {offsets = [0, 0, 320], sizes = [2, 8, 32], strides = [1, 1, 1]} : vector<2x8x384xbf16> to vector<2x8x32xbf16>
    %152 = vector.extract_strided_slice %142 {offsets = [0, 0, 96], sizes = [2, 8, 32], strides = [1, 1, 1]} : vector<2x8x384xbf16> to vector<2x8x32xbf16>
    %153 = vector.extract_strided_slice %142 {offsets = [0, 0, 224], sizes = [2, 8, 32], strides = [1, 1, 1]} : vector<2x8x384xbf16> to vector<2x8x32xbf16>
    %154 = vector.extract_strided_slice %142 {offsets = [0, 0, 352], sizes = [2, 8, 32], strides = [1, 1, 1]} : vector<2x8x384xbf16> to vector<2x8x32xbf16>
    %155 = tpu.concatenate %143, %146, %149, %152 in 0 : vector<2x8x32xbf16>, vector<2x8x32xbf16>, vector<2x8x32xbf16>, vector<2x8x32xbf16> -> vector<8x8x32xbf16>
    %156 = tpu.concatenate %144, %147, %150, %153 in 0 : vector<2x8x32xbf16>, vector<2x8x32xbf16>, vector<2x8x32xbf16>, vector<2x8x32xbf16> -> vector<8x8x32xbf16>
    %157 = tpu.concatenate %145, %148, %151, %154 in 0 : vector<2x8x32xbf16>, vector<2x8x32xbf16>, vector<2x8x32xbf16>, vector<2x8x32xbf16> -> vector<8x8x32xbf16>
    "tpu.trace_start"() <{level = 10 : i32, message = "bqd,bkd->bqk"}> : () -> ()
    %cst_40 = arith.constant dense<0.000000e+00> : vector<8x8x8xf32>
    %158 = tpu.matmul %155, %156, %cst_40 {dimension_numbers = #tpu.dot_dimension_numbers<[2], [2], [1], [1], [0, 0, 0, 1, 1, 1], [0], [0]>} : vector<8x8x32xbf16>, vector<8x8x32xbf16>, vector<8x8x8xf32> -> vector<8x8x8xf32>
    "tpu.trace_stop"() : () -> ()
    %cst_41 = arith.constant dense<0xFF800000> : vector<8x8xf32>
    %159 = vector.multi_reduction <maximumf>, %158, %cst_41 [2] : vector<8x8x8xf32> to vector<8x8xf32>
    %160 = vector.shape_cast %159 : vector<8x8xf32> to vector<8x8x1xf32>
    %161 = vector.broadcast %160 : vector<8x8x1xf32> to vector<8x8x8xf32>
    %162 = arith.subf %158, %161 : vector<8x8x8xf32>
    %163 = math.exp %162 : vector<8x8x8xf32>
    %cst_42 = arith.constant dense<0.000000e+00> : vector<8x8xf32>
    %164 = vector.multi_reduction <add>, %163, %cst_42 [2] : vector<8x8x8xf32> to vector<8x8xf32>
    %165 = vector.shape_cast %164 : vector<8x8xf32> to vector<8x8x1xf32>
    %166 = tpu.reciprocal %165 {approx = true} : vector<8x8x1xf32> -> vector<8x8x1xf32>
    %167 = vector.broadcast %166 : vector<8x8x1xf32> to vector<8x8x8xf32>
    %168 = arith.mulf %163, %167 : vector<8x8x8xf32>
    %169 = arith.truncf %168 : vector<8x8x8xf32> to vector<8x8x8xbf16>
    "tpu.trace_start"() <{level = 10 : i32, message = "bqk,bkd->bqd"}> : () -> ()
    %cst_43 = arith.constant dense<0.000000e+00> : vector<8x8x32xf32>
    %170 = tpu.matmul %169, %157, %cst_43 {dimension_numbers = #tpu.dot_dimension_numbers<[2], [1], [1], [2], [0, 0, 0, 1, 1, 2], [0], [0]>} : vector<8x8x8xbf16>, vector<8x8x32xbf16>, vector<8x8x32xf32> -> vector<8x8x32xf32>
    "tpu.trace_stop"() : () -> ()
    %171 = vector.extract_strided_slice %170 {offsets = [0, 0, 0], sizes = [2, 8, 32], strides = [1, 1, 1]} : vector<8x8x32xf32> to vector<2x8x32xf32>
    %172 = vector.extract_strided_slice %170 {offsets = [2, 0, 0], sizes = [2, 8, 32], strides = [1, 1, 1]} : vector<8x8x32xf32> to vector<2x8x32xf32>
    %173 = vector.extract_strided_slice %170 {offsets = [4, 0, 0], sizes = [2, 8, 32], strides = [1, 1, 1]} : vector<8x8x32xf32> to vector<2x8x32xf32>
    %174 = vector.extract_strided_slice %170 {offsets = [6, 0, 0], sizes = [2, 8, 32], strides = [1, 1, 1]} : vector<8x8x32xf32> to vector<2x8x32xf32>
    %175 = tpu.concatenate %171, %172, %173, %174 in 2 : vector<2x8x32xf32>, vector<2x8x32xf32>, vector<2x8x32xf32>, vector<2x8x32xf32> -> vector<2x8x128xf32>
    %176 = vector.shape_cast %175 : vector<2x8x128xf32> to vector<16x128xf32>
    %177 = arith.truncf %176 : vector<16x128xf32> to vector<16x128xbf16>
    %cst_44 = arith.constant dense<0.000000e+00> : vector<16x128xf32>
    %178 = tpu.matmul %177, %3, %cst_44 {dimension_numbers = #tpu.dot_dimension_numbers<[1], [0], [0], [1], [0, 0, 1, 1], [], []>} : vector<16x128xbf16>, vector<128x128xbf16>, vector<16x128xf32> -> vector<16x128xf32>
    %179 = vector.broadcast %13 : vector<1x128xf32> to vector<16x128xf32>
    %180 = arith.addf %178, %179 : vector<16x128xf32>
    %181 = arith.addf %114, %180 : vector<16x128xf32>
    %cst_45 = arith.constant dense<0.000000e+00> : vector<16xf32>
    %182 = vector.multi_reduction <add>, %181, %cst_45 [1] : vector<16x128xf32> to vector<16xf32>
    %183 = vector.shape_cast %182 : vector<16xf32> to vector<16x1xf32>
    %cst_46 = arith.constant 1.280000e+02 : f32
    %184 = vector.broadcast %cst_46 : f32 to vector<16x1xf32>
    %185 = arith.divf %183, %184 : vector<16x1xf32>
    %186 = vector.broadcast %185 : vector<16x1xf32> to vector<16x128xf32>
    %187 = arith.subf %181, %186 : vector<16x128xf32>
    %188 = arith.mulf %187, %187 : vector<16x128xf32>
    %cst_47 = arith.constant dense<0.000000e+00> : vector<16xf32>
    %189 = vector.multi_reduction <add>, %188, %cst_47 [1] : vector<16x128xf32> to vector<16xf32>
    %190 = vector.shape_cast %189 : vector<16xf32> to vector<16x1xf32>
    %cst_48 = arith.constant 1.280000e+02 : f32
    %191 = vector.broadcast %cst_48 : f32 to vector<16x1xf32>
    %192 = arith.divf %190, %191 : vector<16x1xf32>
    %193 = vector.broadcast %185 : vector<16x1xf32> to vector<16x128xf32>
    %194 = arith.subf %181, %193 : vector<16x128xf32>
    %cst_49 = arith.constant 9.99999974E-6 : f32
    %195 = vector.broadcast %cst_49 : f32 to vector<16x1xf32>
    %196 = arith.addf %192, %195 : vector<16x1xf32>
    %197 = math.rsqrt %196 : vector<16x1xf32>
    %198 = vector.broadcast %197 : vector<16x1xf32> to vector<16x128xf32>
    %199 = arith.mulf %194, %198 : vector<16x128xf32>
    %200 = vector.broadcast %11 : vector<1x128xf32> to vector<16x128xf32>
    %201 = arith.mulf %199, %200 : vector<16x128xf32>
    %202 = vector.broadcast %12 : vector<1x128xf32> to vector<16x128xf32>
    %203 = arith.addf %201, %202 : vector<16x128xf32>
    %204 = arith.truncf %203 : vector<16x128xf32> to vector<16x128xbf16>
    %cst_50 = arith.constant dense<0.000000e+00> : vector<16x256xf32>
    %205 = tpu.matmul %204, %4, %cst_50 {dimension_numbers = #tpu.dot_dimension_numbers<[1], [0], [0], [1], [0, 0, 1, 1], [], []>} : vector<16x128xbf16>, vector<128x256xbf16>, vector<16x256xf32> -> vector<16x256xf32>
    %206 = vector.broadcast %7 : vector<1x256xf32> to vector<16x256xf32>
    %207 = arith.addf %205, %206 : vector<16x256xf32>
    %cst_51 = arith.constant 0.000000e+00 : f32
    %208 = vector.broadcast %cst_51 : f32 to vector<16x256xf32>
    %209 = arith.maximumf %207, %208 : vector<16x256xf32>
    %210 = arith.truncf %209 : vector<16x256xf32> to vector<16x256xbf16>
    %cst_52 = arith.constant dense<0.000000e+00> : vector<16x128xf32>
    %211 = tpu.matmul %210, %5, %cst_52 {dimension_numbers = #tpu.dot_dimension_numbers<[1], [0], [0], [1], [0, 0, 1, 1], [], []>} : vector<16x256xbf16>, vector<256x128xbf16>, vector<16x128xf32> -> vector<16x128xf32>
    %212 = vector.broadcast %14 : vector<1x128xf32> to vector<16x128xf32>
    %213 = arith.addf %211, %212 : vector<16x128xf32>
    %214 = arith.addf %181, %213 : vector<16x128xf32>
    %215 = vector.shape_cast %214 : vector<16x128xf32> to vector<2x8x128xf32>
    %c0_53 = arith.constant 0 : index
    %c0_54 = arith.constant 0 : index
    %c0_55 = arith.constant 0 : index
    %216 = vector.load %arg9[%c0_53, %c0_54, %c0_55] : memref<2x8x128xf32, #tpu.memory_space<vmem>>, vector<2x8x128xf32>
    tpu.vector_store %arg9[%c0_53, %c0_54, %c0_55], %215 {strides = array<i32>} : memref<2x8x128xf32, #tpu.memory_space<vmem>>, vector<2x8x128xf32>,
    return
  }
  func.func @transform_0(%arg0: i32) -> (i32, i32, i32) {
    %c0_i32 = arith.constant 0 : i32
    %c0_i32_0 = arith.constant 0 : i32
    %c0_i32_1 = arith.constant 0 : i32
    return %arg0, %c0_i32, %c0_i32_0 : i32, i32, i32
  }
  func.func @transform_1(%arg0: i32) -> (i32, i32) {
    %c0_i32 = arith.constant 0 : i32
    %c0_i32_0 = arith.constant 0 : i32
    %c0_i32_1 = arith.constant 0 : i32
    return %c0_i32, %c0_i32_0 : i32, i32
  }
  func.func @transform_2(%arg0: i32) -> (i32, i32) {
    %c0_i32 = arith.constant 0 : i32
    %c0_i32_0 = arith.constant 0 : i32
    %c0_i32_1 = arith.constant 0 : i32
    return %c0_i32, %c0_i32_0 : i32, i32
  }
  func.func @transform_3(%arg0: i32) -> (i32, i32) {
    %c0_i32 = arith.constant 0 : i32
    %c0_i32_0 = arith.constant 0 : i32
    %c0_i32_1 = arith.constant 0 : i32
    return %c0_i32, %c0_i32_0 : i32, i32
  }
  func.func @transform_4(%arg0: i32) -> (i32, i32) {
    %c0_i32 = arith.constant 0 : i32
    %c0_i32_0 = arith.constant 0 : i32
    %c0_i32_1 = arith.constant 0 : i32
    return %c0_i32, %c0_i32_0 : i32, i32
  }
  func.func @transform_5(%arg0: i32) -> (i32, i32) {
    %c0_i32 = arith.constant 0 : i32
    %c0_i32_0 = arith.constant 0 : i32
    %c0_i32_1 = arith.constant 0 : i32
    return %c0_i32, %c0_i32_0 : i32, i32
  }
  func.func @transform_6(%arg0: i32) -> (i32, i32) {
    %c0_i32 = arith.constant 0 : i32
    %c0_i32_0 = arith.constant 0 : i32
    %c0_i32_1 = arith.constant 0 : i32
    return %c0_i32, %c0_i32_0 : i32, i32
  }
  func.func @transform_7(%arg0: i32) -> (i32, i32) {
    %c0_i32 = arith.constant 0 : i32
    %c0_i32_0 = arith.constant 0 : i32
    %c0_i32_1 = arith.constant 0 : i32
    return %c0_i32, %c0_i32_0 : i32, i32
  }
  func.func @transform_8(%arg0: i32) -> (i32, i32, i32) {
    %c0_i32 = arith.constant 0 : i32
    %c0_i32_0 = arith.constant 0 : i32
    %c0_i32_1 = arith.constant 0 : i32
    return %arg0, %c0_i32, %c0_i32_0 : i32, i32, i32
  }
}

</mosaic_0001>

<bundles_post_ra>
// kernel: tpu_custom_call.1
= control target key start
LH: loop header
LB: loop body
LE: loop exit
PB: predicated region body
PF: predicated region fallthrough
CT: control target
= control target key end

     0   :  { %13 = vsyncpa [#allocation3], 0  ;;  %s4664_s0 = inlined_call_operand.hbm [shape: f32[2,8,128], index: 0, kind: input, shape index: {}]   ;;  %s4665_s1 = inlined_call_operand.hbm [shape: bf16[128,384], index: 1, kind: input, shape index: {}]   ;;  %s4666_s2 = inlined_call_operand.vmem [shape: f32[1,384], index: 2, kind: input, shape index: {}]   ;;  %s4667_s3 = inlined_call_operand.hbm [shape: bf16[128,128], index: 3, kind: input, shape index: {}]   ;;  %s4668_s4 = inlined_call_operand.hbm [shape: bf16[128,256], index: 4, kind: input, shape index: {}]   ;;  %s4669_s5 = inlined_call_operand.hbm [shape: f32[1,256], index: 5, kind: input, shape index: {}]   ;;  %s4670_s6 = inlined_call_operand.hbm [shape: bf16[256,128], index: 6, kind: input, shape index: {}]   ;;  %s4671_s7 = inlined_call_operand.vmem [shape: f32[6,128], index: 7, kind: input, shape index: {}]   ;;  %s4672_s8 = inlined_call_operand.hbm [shape: f32[2,8,128], index: 8, kind: output, shape index: {}]  }
   0x1   :  { %14 = vsyncpa [#allocation6], 0 }
   0x2   :  { %15 = vsyncpa [#allocation9], 0 }
   0x3   :  { %16 = vsyncpa [#allocation12], 0 }
   0x4   :  { %17 = vsyncpa [#allocation4], 0  ;;  %s3933_s27 = smov [#allocation5]  }
   0x5   :  { %s35_s28 = sshll.u32 %s3933_s27, 4  ;;  %s36_s28 = int_to_ptr.vmem [resolvable:$true] %s35_s28 }
   0x6   :  { %s3791_s29 = scalar_lea.vmem %s36_s28, 3072  ;;  %p3796_p1 = scmp.lt.s32.totalorder %s36_s28, %s36_s28 }
   0x7   :  { %p3792_p0 = scmp.ne.s32.totalorder %s36_s28, %s3791_s29  ;;  %p3797_p2 = scmp.lt.s32.totalorder %s3791_s29, %s3791_s29 }
   0x9   :  { %p3798_p3 = por %p3797_p2, %p3796_p1 }
   0xb   :  { %p3799_p4 = pnand %p3798_p3, %p3792_p0 }
   0xd   :  { %3802 = shalt.err (!%p3799_p4)
}
   0xe   :  { %s3934_s30 = smov 192   ;;  %s3935_s9 = smov 12  }
   0xf   :  { %41 = dma.hbm_to_vmem [thread:$0]  %s4665_s1, 3072, %s36_s28, [#allocation6], %s3934_s30, %s3934_s30, %s3935_s9  }
  0x10   :  { %s3936_s12 = smov [#allocation8]   ;;  %s3937_s14 = smov [#allocation2]  }
  0x11   :  { %s61_s13 = sshll.u32 %s3936_s12, 4  ;;  %s23_s15 = sshll.u32 %s3937_s14, 4  ;;  %s62_s13 = int_to_ptr.vmem [resolvable:$true] %s61_s13  ;;  %s24_s15 = int_to_ptr.vmem [resolvable:$true] %s23_s15 }
  0x12   :  { %s3811_s16 = scalar_lea.vmem %s62_s13, 2048  ;;  %p3816_p6 = scmp.lt.s32.totalorder %s62_s13, %s62_s13 }
  0x13   :  { %p3812_p5 = scmp.ne.s32.totalorder %s62_s13, %s3811_s16  ;;  %p3817_p7 = scmp.lt.s32.totalorder %s3811_s16, %s3811_s16 }
  0x15   :  { %p3818_p8 = por %p3817_p7, %p3816_p6 }
  0x17   :  { %p3819_p9 = pnand %p3818_p8, %p3812_p5 }
  0x19   :  { %3822 = shalt.err (!%p3819_p9)
}
  0x1a   :  { %s3938_s17 = smov 128   ;;  %s3939_s18 = smov 8  }
  0x1b   :  { %67 = dma.hbm_to_vmem [thread:$0]  %s4668_s4, 2048, %s62_s13, [#allocation9], %s3938_s17, %s3938_s17, %s3939_s18  }
  0x1c   :  { %s3831_s1 = scalar_lea.vmem %s24_s15, 256  ;;  %p3836_p11 = scmp.lt.s32.totalorder %s24_s15, %s24_s15 }
  0x1d   :  { %p3832_p10 = scmp.ne.s32.totalorder %s24_s15, %s3831_s1  ;;  %p3837_p12 = scmp.lt.s32.totalorder %s3831_s1, %s3831_s1 }
  0x1f   :  { %p3838_p13 = por %p3837_p12, %p3836_p11 }
  0x21   :  { %p3839_p0 = pnand %p3838_p13, %p3832_p10 }
  0x23   :  { %3842 = shalt.err (!%p3839_p0)
}
  0x24   :  { %29 = dma.hbm_to_vmem [thread:$0]  %s4664_s0, 256, %s24_s15, [#allocation3], %s3938_s17, %s3938_s17, %s3939_s18  }
  0x25   :  { %s3940_s23 = smov [#allocation7]  }
  0x26   :  { %s49_s24 = sshll.u32 %s3940_s23, 4  ;;  %s50_s24 = int_to_ptr.vmem [resolvable:$true] %s49_s24 }
  0x27   :  { %s3851_s25 = scalar_lea.vmem %s50_s24, 1024  ;;  %p3856_p2 = scmp.lt.s32.totalorder %s50_s24, %s50_s24 }
  0x28   :  { %p3852_p1 = scmp.ne.s32.totalorder %s50_s24, %s3851_s25  ;;  %p3857_p3 = scmp.lt.s32.totalorder %s3851_s25, %s3851_s25 }
  0x2a   :  { %p3858_p4 = por %p3857_p3, %p3856_p2 }
  0x2c   :  { %p3859_p5 = pnand %p3858_p4, %p3852_p1 }
  0x2e   :  { %3862 = shalt.err (!%p3859_p5)
}
  0x2f   :  { %s3941_s4 = smov 64   ;;  %s3942_s26 = smov 4  }
  0x30   :  { %55 = dma.hbm_to_vmem [thread:$0]  %s4667_s3, 1024, %s50_s24, [#allocation6], %s3941_s4, %s3941_s4, %s3942_s26  }
  0x31   :  { %s3943_s29 = smov [#allocation10]   ;;  %s3944_s30 = smov [#allocation11]  }
  0x32   :  { %s74_s0 = sshll.u32 %s3943_s29, 4  ;;  %s83_s9 = sshll.u32 %s3944_s30, 4  ;;  %s75_s0 = int_to_ptr.vmem [resolvable:$true] %s74_s0  ;;  %s84_s9 = int_to_ptr.vmem [resolvable:$true] %s83_s9 }
  0x33   :  { %s3871_s10 = scalar_lea.vmem %s75_s0, 32  ;;  %p3876_p7 = scmp.lt.s32.totalorder %s75_s0, %s75_s0 }
  0x34   :  { %p3872_p6 = scmp.ne.s32.totalorder %s75_s0, %s3871_s10  ;;  %p3877_p8 = scmp.lt.s32.totalorder %s3871_s10, %s3871_s10 }
  0x36   :  { %p3878_p9 = por %p3877_p8, %p3876_p7 }
  0x38   :  { %p3879_p10 = pnand %p3878_p9, %p3872_p6 }
  0x3a   :  { %3882 = shalt.err (!%p3879_p10)
}
  0x3b   :  { %77 = dma.hbm_to_vmem [thread:$0]  %s4669_s5, 32, %s75_s0, [#allocation9]  }
  0x3c   :  { %s3891_s13 = scalar_lea.vmem %s84_s9, 2048  ;;  %p3896_p12 = scmp.lt.s32.totalorder %s84_s9, %s84_s9 }
  0x3d   :  { %p3892_p11 = scmp.ne.s32.totalorder %s84_s9, %s3891_s13  ;;  %p3897_p13 = scmp.lt.s32.totalorder %s3891_s13, %s3891_s13 }
  0x3f   :  { %p3898_p0 = por %p3897_p13, %p3896_p12 }
  0x41   :  { %p3899_p1 = pnand %p3898_p0, %p3892_p11 }
  0x43   :  { %3902 = shalt.err (!%p3899_p1)
}
  0x44   :  { %89 = dma.hbm_to_vmem [thread:$0]  %s4670_s6, 2048, %s84_s9, [#allocation12], %s3941_s4, %s3941_s4, %s3942_s26  }
  0x45   :  { %3923 = dma.done.wait [#allocation3], 256  }
  0x46   :  { %3924 = vsyncadd [#allocation3], 4294967040 }
  0x47   :  { %3925 = dma.done.wait [#allocation6], 4096  }
  0x48   :  { %3926 = vsyncadd [#allocation6], 4294963200 }
  0x49   :  { %3927 = dma.done.wait [#allocation9], 2080  }
  0x4a   :  { %3928 = vsyncadd [#allocation9], 4294965216 }
  0x4b   :  { %3929 = dma.done.wait [#allocation12], 2048  }
  0x4c   :  { %3930 = vsyncadd [#allocation12], 4294965248  ;;  %v111_v0 = vld [vmem:[#allocation2] sm:$0xff]  ;;  %v112_v1 = vld [vmem:[#allocation2 + $0x8] sm:$0xff]  ;;  %v3945_v4 = vmov 0.0   ;;  %v4673_v27 = vmov 0   ;;  %v235_v42 = vlaneseq }
  0x4d   :  { %212 = vadd.xlane.f32.xlu0 %v111_v0  ;;  %v3587_v2 = vld [vmem:[#allocation5 + $0xac] ss:$12 sps:$4 sm:$0xff]   ;;  %v3589_v3 = vld [vmem:[#allocation5 + $0xa8] ss:$12 sps:$4 sm:$0xff]   ;;  %3267 = vmatprep.subr.bf16.mxu1 %v3945_v4  ;;  %v3590_v5 = vld [vmem:[#allocation5 + $0xb0] ss:$12 sps:$4 sm:$0xff]  }
  0x4e   :  { %392 = vmatprep.subr.bf16.mxu0 %v3587_v2  ;;  %3268 = vmatpush3.bf16.msra.mxu1 %v3590_v5  ;;  %v3591_v14 = vld [vmem:[#allocation5 + $0x94] ss:$12 sps:$4 sm:$0xff]   ;;  %v3593_v15 = vld [vmem:[#allocation5 + $0x90] ss:$12 sps:$4 sm:$0xff]   ;;  %v3594_v16 = vld [vmem:[#allocation5 + $0x98] ss:$12 sps:$4 sm:$0xff]  }
  0x4f   :  { %393 = vmatpush1.bf16.msra.mxu0 %v3589_v3  ;;  %3269 = vmatprep.subr.bf16.mxu1 %v3945_v4  ;;  %v3595_v17 = vld [vmem:[#allocation5 + $0x7c] ss:$12 sps:$4 sm:$0xff]   ;;  %v3597_v18 = vld [vmem:[#allocation5 + $0x78] ss:$12 sps:$4 sm:$0xff]   ;;  %v3598_v19 = vld [vmem:[#allocation5 + $0x80] ss:$12 sps:$4 sm:$0xff]  }
  0x50   :  { %394 = vmatprep.subr.bf16.mxu0 %v3591_v14  ;;  %v3599_v20 = vld [vmem:[#allocation5 + $0x64] ss:$12 sps:$4 sm:$0xff]   ;;  %v3601_v21 = vld [vmem:[#allocation5 + $0x60] ss:$12 sps:$4 sm:$0xff]   ;;  %v3602_v22 = vld [vmem:[#allocation5 + $0x68] ss:$12 sps:$4 sm:$0xff]   ;;  %424 = vmatprep.mubr.bf16.mxu0 %v4673_v27 }
  0x51   :  { %214 = vadd.xlane.f32.xlu0 %v112_v1  ;;  %v3603_v23 = vld [vmem:[#allocation5 + $0x4c] ss:$12 sps:$4 sm:$0xff]   ;;  %v3605_v24 = vld [vmem:[#allocation5 + $0x48] ss:$12 sps:$4 sm:$0xff]   ;;  %v3606_v25 = vld [vmem:[#allocation5 + $0x50] ss:$12 sps:$4 sm:$0xff]  }
  0x52   :  { %3270 = vmatpush3.bf16.msra.mxu1 %v3594_v16  ;;  %v3607_v26 = vld [vmem:[#allocation5 + $0x34] ss:$12 sps:$4 sm:$0xff]   ;;  %vm3947_vm0 = vmmov 0   ;;  %v3609_v28 = vld [vmem:[#allocation5 + $0x30] ss:$12 sps:$4 sm:$0xff]   ;;  %v4048_v43 = vshrl.u32 %v235_v42, 7 }
  0x53   :  { %395 = vmatpush1.bf16.msra.mxu0 %v3593_v15  ;;  %3271 = vmatprep.subr.bf16.mxu1 %v3945_v4  ;;  %v3610_v29 = vld [vmem:[#allocation5 + $0x38] ss:$12 sps:$4 sm:$0xff]   ;;  %v3611_v30 = vld [vmem:[#allocation5 + $0x1c] ss:$12 sps:$4 sm:$0xff]   ;;  %v3614_v32 = vld [vmem:[#allocation5 + $0x20] ss:$12 sps:$4 sm:$0xff]  }
  0x54   :  { %396 = vmatprep.subr.bf16.mxu0 %v3595_v17  ;;  %3283 = vmatprep.mubr.msk.bf16.mxu1 %vm3947_vm0, %v3945_v4  ;;  %v3613_v31 = vld [vmem:[#allocation5 + $0x18] ss:$12 sps:$4 sm:$0xff]   ;;  %v4042_v34 = vld [vmem:[#allocation5] ss:$12 sps:$4 sm:$0xff]   ;;  %v3618_v35 = vld [vmem:[#allocation5 + $0x8] ss:$12 sps:$4 sm:$0xff]  }
  0x55   :  { %v3615_v33 = vld [vmem:[#allocation5 + $0x4] ss:$12 sps:$4 sm:$0xff]   ;;  %v4051_v44 = vsub.s32 0, %v4048_v43  ;;  %v4064_v49 = vsub.s32 1, %v4048_v43  ;;  %vm524_vm1 = vcmask 261120   ;;  %s3949_s19 = smov 32  }
  0x56   :  { %3272 = vmatpush3.bf16.msra.mxu1 %v3598_v19  ;;  %v4056_v45 = vld [vmem:[%s4671_s7] sm:$0x3f]  ;;  %vm993_vm2 = vcmask 1043456   ;;  %vm893_vm3 = vcmask 64512   ;;  %vm1385_vm4 = vcmask 523264   ;;  %vm1388_vm5 = vcmask 785408  }
  0x57   :  { %397 = vmatpush1.bf16.msra.mxu0 %v3597_v18  ;;  %3273 = vmatprep.subr.bf16.mxu1 %v3945_v4  ;;  %v4061_v48 = vrot.slane %v4056_v45, %v4051_v44  ;;  %v4070_v53 = vrot.slane %v4056_v45, %v4064_v49  ;;  %v209_v58 = vld [vmem:[%s4666_s2] sm:$0x7]  ;;  %s3948_s2 = smov 96  }
  0x58   :  { %398 = vmatprep.subr.bf16.mxu0 %v3599_v20  ;;  %v4083_v59 = vrot.slane %v209_v58, %v4051_v44  ;;  %v4086_v60 = vrot.slane %v209_v58, %v4064_v49 }
  0x5a   :  { %3274 = vmatpush3.bf16.msra.mxu1 %v3602_v22 }
  0x5b   :  { %399 = vmatpush1.bf16.msra.mxu0 %v3601_v21  ;;  %3275 = vmatprep.subr.bf16.mxu1 %v3945_v4 }
  0x5c   :  { %400 = vmatprep.subr.bf16.mxu0 %v3603_v23  ;;  %v259_v23 = vsub.s32 2, %v4048_v43 }
  0x5e   :  { %3276 = vmatpush3.bf16.msra.mxu1 %v3606_v25 }
  0x5f   :  { %401 = vmatpush1.bf16.msra.mxu0 %v3605_v24  ;;  %3277 = vmatprep.subr.bf16.mxu1 %v3945_v4 }
  0x60   :  { %402 = vmatprep.subr.bf16.mxu0 %v3607_v26 }
  0x62   :  { %3278 = vmatpush3.bf16.msra.mxu1 %v3610_v29  ;;  %v4122_v29 = vrot.slane %v209_v58, %v259_v23 }
  0x63   :  { %403 = vmatpush1.bf16.msra.mxu0 %v3609_v28  ;;  %3279 = vmatprep.subr.bf16.mxu1 %v3945_v4 }
  0x64   :  { %404 = vmatprep.subr.bf16.mxu0 %v3611_v30 }
  0x66   :  { %3280 = vmatpush3.bf16.msra.mxu1 %v3614_v32 }
  0x67   :  { %405 = vmatpush1.bf16.msra.mxu0 %v3613_v31  ;;  %3281 = vmatprep.subr.bf16.mxu1 %v3945_v4 }
  0x68   :  { %406 = vmatprep.subr.bf16.mxu0 %v3615_v33 }
  0x6a   :  { %3282 = vmatpush3.bf16.msra.mxu1 %v3618_v35 }
  0x6b   :  { %407 = vmatpush1.bf16.msra.mxu0 %v4042_v34  ;;  %3287 = vmatprep.subr.bf16.mxu1 %v3945_v4 }
  0x6c   :  { %3311 = vmatprep.subr.bf16.mxu0 %v3945_v4 }
  0xd6   :  { %v213_v6 = vpop.xlane.xlu0 %212 }
  0xd7   :  { %v217_v7 = vmul.f32 0.0078125, %v213_v6 }
  0xd9   :  { %v4026_v8 = vsub.f32 %v111_v0, %v217_v7 }
  0xda   :  { %v215_v9 = vpop.xlane.xlu0 %214 }
  0xdb   :  { %v218_v10 = vmul.f32 0.0078125, %v215_v9  ;;  %v221_v11 = vmul.f32 %v4026_v8, %v4026_v8 }
  0xdd   :  { %v4030_v12 = vsub.f32 %v112_v1, %v218_v10  ;;  %223 = vadd.xlane.f32.xlu1 %v221_v11 }
  0xdf   :  { %v222_v13 = vmul.f32 %v4030_v12, %v4030_v12 }
  0xe1   :  { %225 = vadd.xlane.f32.xlu1 %v222_v13 }
 0x166   :  { %v224_v36 = vpop.xlane.xlu1 %223 }
 0x167   :  { %v227_v37 = vmul.f32 0.0078125, %v224_v36 }
 0x169   :  { %v229_v38 = vadd.f32 1e-05, %v227_v37 }
 0x16a   :  { %v226_v39 = vpop.xlane.xlu1 %225 }
 0x16b   :  { %3667 = vrsqrt.f32 %v229_v38  ;;  %v228_v40 = vmul.f32 0.0078125, %v226_v39 }
 0x16d   :  { %v230_v41 = vadd.f32 1e-05, %v228_v40 }
 0x16f   :  { %3669 = vrsqrt.f32 %v230_v41 }
 0x178   :  { %v3668_v46 = vpop.eup %3667 }
 0x179   :  { %v233_v47 = vmul.f32 %v3668_v46, %v4026_v8 }
 0x17b   :  { %v239_v52 = vmul.f32 %v4061_v48, %v233_v47 }
 0x17c   :  { %v3670_v50 = vpop.eup %3669 }
 0x17d   :  { %v234_v51 = vmul.f32 %v3670_v50, %v4030_v12  ;;  %v245_v55 = vadd.f32 %v4070_v53, %v239_v52 }
 0x17f   :  { %v240_v54 = vmul.f32 %v4061_v48, %v234_v51 }
 0x181   :  { %v246_v56 = vadd.f32 %v4070_v53, %v240_v54 }
 0x183   :  { %v247_v57 = vpack.c.bf16 %v246_v56, %v245_v55 }
 0x185   :  { %425 = vmatmul.mubr.bf16.vlgmr.msra.gmra.mxu0 %v247_v57  ;;  %3284 = vmatmul.mubr.bf16.vlgmr.msra.gmra.mxu1 %v247_v57 }
 0x186   :  { %3289 = vmatprep.mubr.msk.bf16.mxu1 %vm3947_vm0, %v3945_v4  ;;  %3313 = vmatprep.mubr.msk.bf16.mxu0 %vm3947_vm0, %v3945_v4 }
 0x245   :  { %v426_v61 = vpop.f32.mrf.mxu0  ;;  %v469_v62 = vpop.f32.mrf.mxu1 }
 0x246   :  { %v427_v1 = vadd.f32 %v426_v61, %v4083_v59  ;;  %v470_v32 = vadd.f32 %v469_v62, %v4122_v29 }
 0x247   :  { %v428_v63 = vpop.f32.mrf.mxu0  ;;  %v3285_v0 = vpop.f32.mrf.mxu1 }
 0x248   :  { %v429_v2 = vadd.f32 %v428_v63, %v4086_v60  ;;  %v4135_v37 = vpack.c.bf16 %v470_v32, %v470_v32 }
 0x249   :  { %v430_v3 = vpop.f32.mrf.mxu0  ;;  %v4090_v5 = vpop.f32.mrf.mxu1 }
 0x24a   :  { %v3115_v6 = vpack.c.bf16 %v429_v2, %v427_v1  ;;  %v431_v9 = vadd.f32 %v430_v3, %v4083_v59  ;;  %v473_v39 = vadd.f32 %v4090_v5, %v4122_v29  ;;  %v995_v41 = vsel %vm993_vm2, %v4135_v37, 0 }
 0x24b   :  { %v432_v7 = vpop.f32.mrf.mxu0  ;;  %v3286_v8 = vpop.f32.mrf.mxu1 }
 0x24c   :  { %v433_v10 = vadd.f32 %v432_v7, %v4086_v60  ;;  %492 = vrot.lane.b32.xlu0 %v3115_v6, %s3948_s2  ;;  %v504_v11 = vrot.slane %v3115_v6, 4  ;;  %v4150_v42 = vpack.c.bf16 %v473_v39, %v473_v39 }
 0x24e   :  { %v3117_v12 = vpack.c.bf16 %v433_v10, %v431_v9  ;;  %v529_v13 = vsel %vm524_vm1, %v504_v11, 0  ;;  %v1041_v46 = vsel %vm993_vm2, %v4150_v42, 0 }
 0x24f   :  { %3288 = vmatpush3.bf16.xpose.msra.mxu1 %v529_v13 }
 0x250   :  { %494 = vrot.lane.b32.xlu1 %v3117_v12, %s3948_s2  ;;  %500 = vrot.lane.b32.xlu0 %v3115_v6, %s3949_s19  ;;  %v505_v14 = vrot.slane %v3117_v12, 4 }
 0x251   :  { %3293 = vmatprep.subr.bf16.mxu1 %v3945_v4 }
 0x252   :  { %v575_v15 = vsel %vm524_vm1, %v505_v14, 0 }
 0x254   :  { %496 = vrot.lane.b32.xlu1 %v3115_v6, %s3941_s4 }
 0x256   :  { %3290 = vmatmul.mubr.msk.bf16.vlgmr.msra.gmra.mxu1 %vm524_vm1, %v3115_v6 }
 0x257   :  { %3294 = vmatpush3.bf16.xpose.msra.mxu1 %v575_v15  ;;  %3295 = vmatprep.mubr.msk.bf16.mxu1 %vm3947_vm0, %v3945_v4 }
 0x258   :  { %498 = vrot.lane.b32.xlu1 %v3117_v12, %s3941_s4  ;;  %3299 = vmatprep.subr.bf16.mxu1 %v3945_v4 }
 0x25c   :  { %502 = vrot.lane.b32.xlu1 %v3117_v12, %s3949_s19 }
 0x25e   :  { %3296 = vmatmul.mubr.msk.bf16.vlgmr.msra.gmra.mxu1 %vm524_vm1, %v3117_v12 }
 0x25f   :  { %3301 = vmatprep.mubr.msk.bf16.mxu1 %vm3947_vm0, %v3945_v4 }
 0x2be   :  { %v493_v16 = vpop.permute.xlu0 %492 }
 0x2bf   :  { %v506_v17 = vrot.slane %v493_v16, 4 }
 0x2c1   :  { %v621_v18 = vsel %vm524_vm1, %v506_v17, 0 }
 0x2c2   :  { %v495_v19 = vpop.permute.xlu1 %494  ;;  %3300 = vmatpush3.bf16.xpose.msra.mxu1 %v621_v18  ;;  %v501_v26 = vpop.permute.xlu0 %500 }
 0x2c3   :  { %3305 = vmatprep.subr.bf16.mxu1 %v3945_v4  ;;  %v507_v20 = vrot.slane %v495_v19, 4  ;;  %v510_v30 = vrot.slane %v501_v26, 4 }
 0x2c5   :  { %v667_v25 = vsel %vm524_vm1, %v507_v20, 0  ;;  %v805_v35 = vsel %vm524_vm1, %v510_v30, 0 }
 0x2c6   :  { %v497_v21 = vpop.permute.xlu1 %496 }
 0x2c7   :  { %v508_v22 = vrot.slane %v497_v21, 4 }
 0x2c9   :  { %3302 = vmatmul.mubr.msk.bf16.vlgmr.msra.gmra.mxu1 %vm524_vm1, %v493_v16  ;;  %v713_v24 = vsel %vm524_vm1, %v508_v22, 0 }
 0x2ca   :  { %3312 = vmatpush3.bf16.xpose.msra.mxu0 %v713_v24  ;;  %v499_v28 = vpop.permute.xlu1 %498  ;;  %3306 = vmatpush3.bf16.xpose.msra.mxu1 %v667_v25 }
 0x2cb   :  { %3307 = vmatprep.mubr.msk.bf16.mxu1 %vm3947_vm0, %v3945_v4  ;;  %3317 = vmatprep.subr.bf16.mxu1 %v3945_v4  ;;  %v509_v31 = vrot.slane %v499_v28, 4 }
 0x2cc   :  { %3323 = vmatprep.subr.bf16.mxu0 %v3945_v4 }
 0x2cd   :  { %v759_v33 = vsel %vm524_vm1, %v509_v31, 0 }
 0x2ce   :  { %v503_v36 = vpop.permute.xlu1 %502 }
 0x2cf   :  { %v511_v38 = vrot.slane %v503_v36, 4 }
 0x2d1   :  { %3308 = vmatmul.mubr.msk.bf16.vlgmr.msra.gmra.mxu1 %vm524_vm1, %v495_v19  ;;  %3314 = vmatmul.mubr.msk.bf16.vlgmr.msra.gmra.mxu0 %vm524_vm1, %v497_v21  ;;  %v851_v40 = vsel %vm524_vm1, %v511_v38, 0 }
 0x2d2   :  { %3318 = vmatpush3.bf16.xpose.msra.mxu1 %v759_v33  ;;  %3324 = vmatpush3.bf16.xpose.msra.mxu0 %v805_v35 }
 0x2d3   :  { %3319 = vmatprep.mubr.msk.bf16.mxu1 %vm3947_vm0, %v3945_v4  ;;  %3325 = vmatprep.mubr.msk.bf16.mxu0 %vm3947_vm0, %v3945_v4 }
 0x2d4   :  { %3329 = vmatprep.subr.bf16.mxu1 %v3945_v4  ;;  %3335 = vmatprep.subr.bf16.mxu0 %v3945_v4 }
 0x2d9   :  { %3320 = vmatmul.mubr.msk.bf16.vlgmr.msra.gmra.mxu1 %vm524_vm1, %v499_v28  ;;  %3326 = vmatmul.mubr.msk.bf16.vlgmr.msra.gmra.mxu0 %vm524_vm1, %v501_v26 }
 0x2da   :  { %3330 = vmatpush3.bf16.xpose.msra.mxu1 %v851_v40  ;;  %3336 = vmatpush3.bf16.msra.mxu0 %v995_v41 }
 0x2db   :  { %3331 = vmatprep.mubr.msk.bf16.mxu1 %vm3947_vm0, %v3945_v4  ;;  %3341 = vmatprep.subr.bf16.mxu1 %v3945_v4 }
 0x2dc   :  { %3337 = vmatprep.mubr.msk.bf16.mxu0 %vm3947_vm0, %v3945_v4  ;;  %3347 = vmatprep.subr.bf16.mxu0 %v3945_v4 }
 0x2e1   :  { %3332 = vmatmul.mubr.msk.bf16.vlgmr.msra.gmra.mxu1 %vm524_vm1, %v503_v36 }
 0x2e2   :  { %3342 = vmatpush3.bf16.msra.mxu1 %v1041_v46  ;;  %3343 = vmatprep.mubr.msk.bf16.mxu1 %vm3947_vm0, %v3945_v4 }
 0x2e3   :  { %3353 = vmatprep.subr.bf16.mxu1 %v3945_v4 }
 0x316   :  { %v565_v47 = vpop.f32.mrf.mxu1 }
 0x317   :  { %v894_v50 = vsel %vm893_vm3, %v565_v47, -inf }
 0x318   :  { %895 = vmax.xlane.f32.xlu0 %v894_v50  ;;  %v3291_v51 = vpop.f32.mrf.mxu1 }
 0x31a   :  { %v568_v52 = vpop.f32.mrf.mxu1 }
 0x31c   :  { %v3292_v54 = vpop.f32.mrf.mxu1 }
 0x31e   :  { %v611_v55 = vpop.f32.mrf.mxu1 }
 0x31f   :  { %v897_v56 = vsel %vm893_vm3, %v611_v55, -inf }
 0x320   :  { %898 = vmax.xlane.f32.xlu1 %v897_v56  ;;  %v3297_v57 = vpop.f32.mrf.mxu1 }
 0x322   :  { %v614_v58 = vpop.f32.mrf.mxu1 }
 0x324   :  { %v3298_v61 = vpop.f32.mrf.mxu1 }
 0x389   :  { %v657_v62 = vpop.f32.mrf.mxu1 }
 0x38a   :  { %v900_v63 = vsel %vm893_vm3, %v657_v62, -inf }
 0x38b   :  { %901 = vmax.xlane.f32.xlu0 %v900_v63  ;;  %v3303_v0 = vpop.f32.mrf.mxu1 }
 0x38d   :  { %v660_v1 = vpop.f32.mrf.mxu1 }
 0x38f   :  { %v3304_v2 = vpop.f32.mrf.mxu1 }
 0x391   :  { %v703_v3 = vpop.f32.mrf.mxu1  ;;  %v4161_v5 = vpop.f32.mrf.mxu0 }
 0x392   :  { %v903_v6 = vsel %vm893_vm3, %v703_v3, -inf  ;;  %v906_v11 = vsel %vm893_vm3, %v4161_v5, -inf }
 0x393   :  { %v3315_v7 = vpop.f32.mrf.mxu0  ;;  %904 = vmax.xlane.f32.xlu0 %v903_v6  ;;  %v3309_v8 = vpop.f32.mrf.mxu1 }
 0x395   :  { %v706_v9 = vpop.f32.mrf.mxu1  ;;  %v752_v10 = vpop.f32.mrf.mxu0 }
 0x397   :  { %v3316_v12 = vpop.f32.mrf.mxu0  ;;  %907 = vmax.xlane.f32.xlu0 %v906_v11  ;;  %v3310_v13 = vpop.f32.mrf.mxu1 }
 0x399   :  { %v795_v14 = vpop.f32.mrf.mxu1  ;;  %v4166_v15 = vpop.f32.mrf.mxu0 }
 0x39a   :  { %v912_v16 = vsel %vm893_vm3, %v4166_v15, -inf  ;;  %v909_v17 = vsel %vm893_vm3, %v795_v14, -inf }
 0x39b   :  { %v3327_v18 = vpop.f32.mrf.mxu0  ;;  %913 = vmax.xlane.f32.xlu0 %v912_v16  ;;  %910 = vmax.xlane.f32.xlu1 %v909_v17  ;;  %v3321_v19 = vpop.f32.mrf.mxu1 }
 0x39d   :  { %v798_v20 = vpop.f32.mrf.mxu1  ;;  %v844_v21 = vpop.f32.mrf.mxu0 }
 0x39f   :  { %v3322_v22 = vpop.f32.mrf.mxu1  ;;  %v3328_v24 = vpop.f32.mrf.mxu0 }
 0x3a1   :  { %v896_v25 = vpop.xlane.xlu0 %895  ;;  %v887_v26 = vpop.f32.mrf.mxu1 }
 0x3a2   :  { %v918_v28 = vsub.f32 %v565_v47, %v896_v25  ;;  %v915_v30 = vsel %vm893_vm3, %v887_v26, -inf }
 0x3a3   :  { %916 = vmax.xlane.f32.xlu1 %v915_v30  ;;  %v3333_v31 = vpop.f32.mrf.mxu1 }
 0x3a4   :  { %v926_v32 = vmul.f32 1.442695, %v918_v28 }
 0x3a5   :  { %v890_v33 = vpop.f32.mrf.mxu1 }
 0x3a6   :  { %3671 = vpow2.f32 %v926_v32 }
 0x3a7   :  { %v3334_v35 = vpop.f32.mrf.mxu1 }
 0x3a9   :  { %v899_v36 = vpop.xlane.xlu1 %898 }
 0x3aa   :  { %v919_v38 = vsub.f32 %v611_v55, %v899_v36 }
 0x3ac   :  { %v928_v39 = vmul.f32 1.442695, %v919_v38 }
 0x3ae   :  { %3673 = vpow2.f32 %v928_v39 }
 0x3b3   :  { %v3672_v40 = vpop.eup %3671 }
 0x3b4   :  { %v942_v41 = vsel %vm893_vm3, %v3672_v40, 0.0 }
 0x3b5   :  { %943 = vadd.xlane.f32.xlu0 %v942_v41 }
 0x3bb   :  { %v3674_v46 = vpop.eup %3673 }
 0x3bc   :  { %v945_v50 = vsel %vm893_vm3, %v3674_v46, 0.0 }
 0x3bd   :  { %946 = vadd.xlane.f32.xlu1 %v945_v50 }
 0x3ce   :  { %514 = vrot.lane.b32.xlu1 %v4150_v42, %s3948_s2 }
 0x3d2   :  { %516 = vrot.lane.b32.xlu1 %v4135_v37, %s3941_s4 }
 0x3d6   :  { %518 = vrot.lane.b32.xlu1 %v4150_v42, %s3941_s4 }
 0x414   :  { %v902_v47 = vpop.xlane.xlu0 %901 }
 0x415   :  { %v920_v51 = vsub.f32 %v657_v62, %v902_v47 }
 0x417   :  { %v930_v52 = vmul.f32 1.442695, %v920_v51 }
 0x419   :  { %3675 = vpow2.f32 %v930_v52 }
 0x41c   :  { %v905_v54 = vpop.xlane.xlu0 %904 }
 0x41d   :  { %v921_v55 = vsub.f32 %v703_v3, %v905_v54 }
 0x41f   :  { %v932_v56 = vmul.f32 1.442695, %v921_v55 }
 0x420   :  { %v908_v7 = vpop.xlane.xlu0 %907 }
 0x421   :  { %3677 = vpow2.f32 %v932_v56 }
 0x424   :  { %v911_v57 = vpop.xlane.xlu1 %910  ;;  %v914_v10 = vpop.xlane.xlu0 %913 }
 0x425   :  { %v923_v58 = vsub.f32 %v795_v14, %v911_v57  ;;  %v922_v14 = vsub.f32 %v4161_v5, %v908_v7  ;;  %v924_v18 = vsub.f32 %v4166_v15, %v914_v10 }
 0x426   :  { %v4180_v61 = vpop.eup %3675 }
 0x427   :  { %v936_v63 = vmul.f32 1.442695, %v923_v58  ;;  %v948_v0 = vsel %vm893_vm3, %v4180_v61, 0.0  ;;  %v934_v17 = vmul.f32 1.442695, %v922_v14 }
 0x428   :  { %949 = vadd.xlane.f32.xlu0 %v948_v0  ;;  %v938_v20 = vmul.f32 1.442695, %v924_v18 }
 0x429   :  { %3679 = vpow2.f32 %v936_v63 }
 0x42c   :  { %v917_v1 = vpop.xlane.xlu1 %916 }
 0x42d   :  { %v925_v2 = vsub.f32 %v887_v26, %v917_v1 }
 0x42e   :  { %v4184_v6 = vpop.eup %3677 }
 0x42f   :  { %v940_v62 = vmul.f32 1.442695, %v925_v2  ;;  %v951_v3 = vsel %vm893_vm3, %v4184_v6, 0.0 }
 0x430   :  { %952 = vadd.xlane.f32.xlu1 %v951_v3 }
 0x431   :  { %3681 = vpow2.f32 %v940_v62 }
 0x436   :  { %v4188_v8 = vpop.eup %3679 }
 0x437   :  { %v957_v9 = vsel %vm893_vm3, %v4188_v8, 0.0 }
 0x438   :  { %958 = vadd.xlane.f32.xlu1 %v957_v9 }
 0x43e   :  { %v4192_v11 = vpop.eup %3681  ;;  %512 = vrot.lane.b32.xlu0 %v4135_v37, %s3948_s2  ;;  %v944_v12 = vpop.xlane.xlu0 %943 }
 0x43f   :  { %3683 = vrcp.f32 %v944_v12  ;;  %v963_v13 = vsel %vm893_vm3, %v4192_v11, 0.0 }
 0x440   :  { %964 = vadd.xlane.f32.xlu1 %v963_v13 }
 0x446   :  { %v947_v16 = vpop.xlane.xlu1 %946 }
 0x447   :  { %3685 = vrcp.f32 %v947_v16 }
 0x448   :  { %3687 = vpow2.f32 %v934_v17 }
 0x449   :  { %3689 = vpow2.f32 %v938_v20 }
 0x44a   :  { %v515_v25 = vpop.permute.xlu1 %514 }
 0x44b   :  { %v1133_v15 = vsel %vm993_vm2, %v515_v25, 0 }
 0x44c   :  { %v3684_v19 = vpop.eup %3683 }
 0x44d   :  { %v974_v21 = vmul.f32 %v3684_v19, %v3672_v40 }
 0x44e   :  { %v517_v32 = vpop.permute.xlu1 %516 }
 0x44f   :  { %v982_v22 = vpack.c.bf16 %v974_v21, %v974_v21 }
 0x451   :  { %3338 = vmatmul.mubr.msk.bf16.vlgmr.msra.gmra.mxu0 %vm893_vm3, %v982_v22  ;;  %522 = vrot.lane.b32.xlu1 %v4150_v42, %s3949_s19 }
 0x452   :  { %3349 = vmatprep.mubr.msk.bf16.mxu0 %vm3947_vm0, %v3945_v4  ;;  %v519_v35 = vpop.permute.xlu1 %518 }
 0x453   :  { %v1225_v55 = vsel %vm993_vm2, %v519_v35, 0 }
 0x454   :  { %v3686_v5 = vpop.eup %3685 }
 0x455   :  { %v975_v24 = vmul.f32 %v3686_v5, %v3674_v46  ;;  %v3688_v28 = vpop.eup %3687 }
 0x456   :  { %v954_v42 = vsel %vm893_vm3, %v3688_v28, 0.0  ;;  %v3690_v30 = vpop.eup %3689 }
 0x457   :  { %v983_v26 = vpack.c.bf16 %v975_v24, %v975_v24  ;;  %v960_v31 = vsel %vm893_vm3, %v3690_v30, 0.0  ;;  %v3619_v24 = vld [vmem:[#allocation7 + $0x38] sm:$0xff]  }
 0x459   :  { %3344 = vmatmul.mubr.msk.bf16.vlgmr.msra.gmra.mxu1 %vm893_vm3, %v983_v26  ;;  %v3620_v26 = vld [vmem:[#allocation7 + $0x30] sm:$0xff]  }
 0x45a   :  { %3354 = vmatpush3.bf16.msra.mxu1 %v1133_v15  ;;  %3355 = vmatprep.mubr.msk.bf16.mxu1 %vm3947_vm0, %v3945_v4 }
 0x45b   :  { %3365 = vmatprep.subr.bf16.mxu1 %v3945_v4 }
 0x45d   :  { %955 = vadd.xlane.f32.xlu0 %v954_v42  ;;  %v3621_v42 = vld [vmem:[#allocation7 + $0x28] sm:$0xff]  }
 0x461   :  { %961 = vadd.xlane.f32.xlu0 %v960_v31 }
 0x477   :  { %520 = vrot.lane.b32.xlu0 %v4135_v37, %s3949_s19  ;;  %v1179_v37 = vsel %vm993_vm2, %v517_v32, 0 }
 0x4b1   :  { %v950_v33 = vpop.xlane.xlu0 %949 }
 0x4b2   :  { %3691 = vrcp.f32 %v950_v33  ;;  %v3622_v33 = vld [vmem:[#allocation7 + $0x20] sm:$0xff]  }
 0x4b5   :  { %v513_v36 = vpop.permute.xlu0 %512 }
 0x4b6   :  { %v1087_v38 = vsel %vm993_vm2, %v513_v36, 0 }
 0x4b7   :  { %3348 = vmatpush3.bf16.msra.mxu0 %v1087_v38  ;;  %v3623_v38 = vld [vmem:[#allocation7 + $0x18] sm:$0xff]  }
 0x4b8   :  { %3359 = vmatprep.subr.bf16.mxu0 %v3945_v4 }
 0x4b9   :  { %v953_v39 = vpop.xlane.xlu1 %952 }
 0x4ba   :  { %3693 = vrcp.f32 %v953_v39 }
 0x4bf   :  { %v3692_v40 = vpop.eup %3691 }
 0x4c0   :  { %v976_v41 = vmul.f32 %v3692_v40, %v4180_v61 }
 0x4c1   :  { %v959_v46 = vpop.xlane.xlu1 %958 }
 0x4c2   :  { %v984_v50 = vpack.c.bf16 %v976_v41, %v976_v41  ;;  %3695 = vrcp.f32 %v959_v46 }
 0x4c4   :  { %3350 = vmatmul.mubr.msk.bf16.vlgmr.msra.gmra.mxu0 %vm893_vm3, %v984_v50 }
 0x4c5   :  { %3360 = vmatpush3.bf16.msra.mxu0 %v1179_v37  ;;  %3361 = vmatprep.mubr.msk.bf16.mxu0 %vm3947_vm0, %v3945_v4 }
 0x4c6   :  { %3371 = vmatprep.subr.bf16.mxu0 %v3945_v4 }
 0x4c7   :  { %v3694_v47 = vpop.eup %3693 }
 0x4c8   :  { %v977_v51 = vmul.f32 %v3694_v47, %v4184_v6 }
 0x4c9   :  { %v965_v52 = vpop.xlane.xlu1 %964 }
 0x4ca   :  { %3697 = vrcp.f32 %v965_v52  ;;  %v985_v54 = vpack.c.bf16 %v977_v51, %v977_v51  ;;  %v3624_v52 = vld [vmem:[#allocation7 + $0x10] sm:$0xff]  }
 0x4cc   :  { %3356 = vmatmul.mubr.msk.bf16.vlgmr.msra.gmra.mxu1 %vm893_vm3, %v985_v54  ;;  %v3625_v54 = vld [vmem:[#allocation7 + $0x8] sm:$0xff]  }
 0x4cd   :  { %3366 = vmatpush3.bf16.msra.mxu1 %v1225_v55  ;;  %3367 = vmatprep.mubr.msk.bf16.mxu1 %vm3947_vm0, %v3945_v4  ;;  %v523_v58 = vpop.permute.xlu1 %522 }
 0x4ce   :  { %3377 = vmatprep.subr.bf16.mxu1 %v3945_v4  ;;  %v1317_v63 = vsel %vm993_vm2, %v523_v58, 0 }
 0x4cf   :  { %v3696_v56 = vpop.eup %3695 }
 0x4d0   :  { %v979_v57 = vmul.f32 %v3696_v56, %v4188_v8  ;;  %v3626_v56 = vld [vmem:[#allocation7] sm:$0xff]  }
 0x4d2   :  { %v987_v61 = vpack.c.bf16 %v979_v57, %v979_v57 }
 0x4d4   :  { %3368 = vmatmul.mubr.msk.bf16.vlgmr.msra.gmra.mxu1 %vm893_vm3, %v987_v61 }
 0x4d5   :  { %3378 = vmatpush3.bf16.msra.mxu1 %v1317_v63  ;;  %3379 = vmatprep.mubr.msk.bf16.mxu1 %vm3947_vm0, %v3945_v4 }
 0x4d7   :  { %v3698_v0 = vpop.eup %3697 }
 0x4d8   :  { %v981_v1 = vmul.f32 %v3698_v0, %v4192_v11 }
 0x4da   :  { %v989_v2 = vpack.c.bf16 %v981_v1, %v981_v1 }
 0x4dc   :  { %3380 = vmatmul.mubr.msk.bf16.vlgmr.msra.gmra.mxu1 %vm893_vm3, %v989_v2 }
 0x4dd   :  { %1645 = vmatprep.mubr.bf16.mxu1 %v4673_v27 }
 0x4e6   :  { %v956_v6 = vpop.xlane.xlu0 %955 }
 0x4e7   :  { %3699 = vrcp.f32 %v956_v6 }
 0x4ea   :  { %v962_v62 = vpop.xlane.xlu0 %961 }
 0x4eb   :  { %3701 = vrcp.f32 %v962_v62 }
 0x4ee   :  { %v521_v8 = vpop.permute.xlu0 %520 }
 0x4ef   :  { %v1271_v12 = vsel %vm993_vm2, %v521_v8, 0 }
 0x4f4   :  { %v3700_v3 = vpop.eup %3699 }
 0x4f5   :  { %v978_v7 = vmul.f32 %v3700_v3, %v3688_v28 }
 0x4f7   :  { %v986_v9 = vpack.c.bf16 %v978_v7, %v978_v7 }
 0x4f8   :  { %v3702_v10 = vpop.eup %3701 }
 0x4f9   :  { %3362 = vmatmul.mubr.msk.bf16.vlgmr.msra.gmra.mxu0 %vm893_vm3, %v986_v9  ;;  %v980_v11 = vmul.f32 %v3702_v10, %v3690_v30 }
 0x4fa   :  { %3372 = vmatpush3.bf16.msra.mxu0 %v1271_v12  ;;  %3373 = vmatprep.mubr.msk.bf16.mxu0 %vm3947_vm0, %v3945_v4 }
 0x4fb   :  { %3383 = vmatprep.subr.bf16.mxu0 %v3945_v4  ;;  %v988_v13 = vpack.c.bf16 %v980_v11, %v980_v11 }
 0x501   :  { %3374 = vmatmul.mubr.msk.bf16.vlgmr.msra.gmra.mxu0 %vm893_vm3, %v988_v13 }
 0x502   :  { %3399 = vmatprep.mubr.msk.bf16.mxu0 %vm3947_vm0, %v3945_v4  ;;  %3384 = vmatpush3.bf16.msra.mxu0 %v3619_v24 }
 0x503   :  { %3385 = vmatprep.subr.bf16.mxu0 %v3945_v4 }
 0x506   :  { %3386 = vmatpush3.bf16.msra.mxu0 %v3620_v26 }
 0x507   :  { %3387 = vmatprep.subr.bf16.mxu0 %v3945_v4 }
 0x50a   :  { %3388 = vmatpush3.bf16.msra.mxu0 %v3621_v42 }
 0x50b   :  { %3389 = vmatprep.subr.bf16.mxu0 %v3945_v4 }
 0x50e   :  { %3390 = vmatpush3.bf16.msra.mxu0 %v3622_v33  ;;  %v3748_v33 = vld [vmem:[#allocation2 + $0x8] sm:$0xff] }
 0x50f   :  { %3391 = vmatprep.subr.bf16.mxu0 %v3945_v4 }
 0x511   :  { %v4244_v14 = vpop.f32.mrf.mxu0 }
 0x512   :  { %3392 = vmatpush3.bf16.msra.mxu0 %v3623_v38  ;;  %v4280_v38 = vld [vmem:[#allocation8 + $0x74] ss:$8 sps:$4 sm:$0xff]  }
 0x513   :  { %v3339_v16 = vpop.f32.mrf.mxu0  ;;  %3393 = vmatprep.subr.bf16.mxu0 %v3945_v4  ;;  %1613 = vmatprep.subr.bf16.mxu1 %v4280_v38 }
 0x515   :  { %v1034_v17 = vpop.f32.mrf.mxu0 }
 0x516   :  { %3394 = vmatpush3.bf16.msra.mxu0 %v3624_v52  ;;  %v4294_v52 = vld [vmem:[#allocation8 + $0x64] ss:$8 sps:$4 sm:$0xff]  }
 0x517   :  { %v3340_v18 = vpop.f32.mrf.mxu0  ;;  %3395 = vmatprep.subr.bf16.mxu0 %v3945_v4 }
 0x519   :  { %v4246_v19 = vpop.f32.mrf.mxu1 }
 0x51a   :  { %3396 = vmatpush3.bf16.msra.mxu0 %v3625_v54  ;;  %v4296_v54 = vld [vmem:[#allocation8 + $0x60] ss:$8 sps:$4 sm:$0xff]  }
 0x51b   :  { %v3345_v20 = vpop.f32.mrf.mxu1  ;;  %3397 = vmatprep.subr.bf16.mxu0 %v3945_v4 }
 0x51d   :  { %v1080_v21 = vpop.f32.mrf.mxu1 }
 0x51e   :  { %3398 = vmatpush3.bf16.msra.mxu0 %v3626_v56  ;;  %v4302_v56 = vld [vmem:[#allocation8 + $0x50] ss:$8 sps:$4 sm:$0xff]  }
 0x51f   :  { %v3346_v22 = vpop.f32.mrf.mxu1 }
 0x584   :  { %v1123_v5 = vpop.f32.mrf.mxu0 }
 0x586   :  { %v3351_v25 = vpop.f32.mrf.mxu0 }
 0x587   :  { %v1394_v25 = vsub.s32 4, %v4048_v43 }
 0x588   :  { %v1126_v28 = vpop.f32.mrf.mxu0 }
 0x589   :  { %v4268_v26 = vrot.slane %v4056_v45, %v1394_v25 }
 0x58a   :  { %v3352_v15 = vpop.f32.mrf.mxu0 }
 0x58b   :  { %v3747_v15 = vld [vmem:[#allocation2] sm:$0xff] }
 0x58c   :  { %v1169_v30 = vpop.f32.mrf.mxu1 }
 0x58d   :  { %v3557_v31 = vpack.i.bf16 %v1169_v30, %v1123_v5 }
 0x58e   :  { %v3357_v32 = vpop.f32.mrf.mxu1 }
 0x58f   :  { %3558 = vrot.lane.b32.xlu0 %v3557_v31, %s3949_s19 }
 0x590   :  { %v1172_v35 = vpop.f32.mrf.mxu1 }
 0x592   :  { %v3358_v36 = vpop.f32.mrf.mxu1 }
 0x593   :  { %v4278_v36 = vld [vmem:[#allocation8 + $0x70] ss:$8 sps:$4 sm:$0xff]  }
 0x594   :  { %v1261_v39 = vpop.f32.mrf.mxu1  ;;  %1614 = vmatpush1.bf16.msra.mxu1 %v4278_v36 }
 0x595   :  { %1615 = vmatprep.subr.bf16.mxu1 %v4294_v52 }
 0x596   :  { %v3369_v40 = vpop.f32.mrf.mxu1 }
 0x598   :  { %v1264_v41 = vpop.f32.mrf.mxu1  ;;  %1616 = vmatpush1.bf16.msra.mxu1 %v4296_v54 }
 0x59a   :  { %v3370_v46 = vpop.f32.mrf.mxu1 }
 0x59c   :  { %v1353_v50 = vpop.f32.mrf.mxu1 }
 0x59e   :  { %v3381_v37 = vpop.f32.mrf.mxu1 }
 0x5a0   :  { %v1356_v47 = vpop.f32.mrf.mxu1 }
 0x5a2   :  { %v3382_v51 = vpop.f32.mrf.mxu1 }
 0x5b9   :  { %v1215_v55 = vpop.f32.mrf.mxu0 }
 0x5ba   :  { %v3562_v57 = vpack.i.bf16 %v1261_v39, %v1215_v55  ;;  %v4300_v55 = vld [vmem:[#allocation8 + $0x54] ss:$8 sps:$4 sm:$0xff]  }
 0x5bb   :  { %v3363_v58 = vpop.f32.mrf.mxu0  ;;  %1617 = vmatprep.subr.bf16.mxu1 %v4300_v55 }
 0x5bc   :  { %3563 = vrot.lane.b32.xlu1 %v3562_v57, %s3941_s4  ;;  %v4305_v57 = vld [vmem:[#allocation8 + $0x44] ss:$8 sps:$4 sm:$0xff]   ;;  %1618 = vmatpush1.bf16.msra.mxu1 %v4302_v56  ;;  %v4308_v58 = vld [vmem:[#allocation8 + $0x40] ss:$8 sps:$4 sm:$0xff]  }
 0x5bd   :  { %v1218_v61 = vpop.f32.mrf.mxu0  ;;  %1619 = vmatprep.subr.bf16.mxu1 %v4305_v57 }
 0x5be   :  { %v4311_v61 = vld [vmem:[#allocation8 + $0x34] ss:$8 sps:$4 sm:$0xff]  }
 0x5bf   :  { %v3364_v63 = vpop.f32.mrf.mxu0 }
 0x5c0   :  { %1620 = vmatpush1.bf16.msra.mxu1 %v4308_v58  ;;  %v4314_v63 = vld [vmem:[#allocation8 + $0x30] ss:$8 sps:$4 sm:$0xff]  }
 0x5c1   :  { %v1307_v0 = vpop.f32.mrf.mxu0  ;;  %1621 = vmatprep.subr.bf16.mxu1 %v4311_v61 }
 0x5c2   :  { %v3567_v1 = vpack.i.bf16 %v1353_v50, %v1307_v0  ;;  %v4317_v0 = vld [vmem:[#allocation8 + $0x24] ss:$8 sps:$4 sm:$0xff]  }
 0x5c3   :  { %v3375_v2 = vpop.f32.mrf.mxu0 }
 0x5c4   :  { %3568 = vrot.lane.b32.xlu0 %v3567_v1, %s3948_s2  ;;  %1622 = vmatpush1.bf16.msra.mxu1 %v4314_v63  ;;  %v4320_v1 = vld [vmem:[#allocation8 + $0x20] ss:$8 sps:$4 sm:$0xff]   ;;  %v4323_v2 = vld [vmem:[#allocation8 + $0x14] ss:$8 sps:$4 sm:$0xff]  }
 0x5c5   :  { %v1310_v6 = vpop.f32.mrf.mxu0  ;;  %1623 = vmatprep.subr.bf16.mxu1 %v4317_v0 }
 0x5c6   :  { %v4326_v6 = vld [vmem:[#allocation8 + $0x10] ss:$8 sps:$4 sm:$0xff]  }
 0x5c7   :  { %v3376_v62 = vpop.f32.mrf.mxu0 }
 0x5c8   :  { %1624 = vmatpush1.bf16.msra.mxu1 %v4320_v1  ;;  %v4329_v62 = vld [vmem:[#allocation8 + $0x4] ss:$8 sps:$4 sm:$0xff]  }
 0x5c9   :  { %1625 = vmatprep.subr.bf16.mxu1 %v4323_v2 }
 0x5cc   :  { %1626 = vmatpush1.bf16.msra.mxu1 %v4326_v6 }
 0x5cd   :  { %1627 = vmatprep.subr.bf16.mxu1 %v4329_v62 }
 0x601   :  { %v3559_v3 = vpop.permute.xlu0 %3558 }
 0x602   :  { %v3561_v8 = vunpack.i.h.bf16 %v3559_v3  ;;  %v3560_v9 = vunpack.i.l.bf16 %v3559_v3  ;;  %v4332_v3 = vld [vmem:[#allocation8] ss:$8 sps:$4 sm:$0xff]  }
 0x603   :  { %1628 = vmatpush1.bf16.msra.mxu1 %v4332_v3 }
 0x604   :  { %v1384_v13 = vsel %vm524_vm1, %v4246_v19, %v3561_v8  ;;  %v1383_v16 = vsel %vm524_vm1, %v4244_v14, %v3560_v9  ;;  %v3652_v8 = vld [vmem:[#allocation11 + $0x38] sm:$0xff]   ;;  %v3653_v9 = vld [vmem:[#allocation11 + $0x70] sm:$0xff]  }
 0x62e   :  { %v3564_v7 = vpop.permute.xlu1 %3563 }
 0x62f   :  { %v3566_v10 = vunpack.i.h.bf16 %v3564_v7  ;;  %v3565_v12 = vunpack.i.l.bf16 %v3564_v7  ;;  %v4336_v7 = vld [vmem:[#allocation11 + $0x78] sm:$0xff]  }
 0x630   :  { %3173 = vmatprep.subr.bf16.mxu0 %v4336_v7 }
 0x631   :  { %v1387_v20 = vsel %vm1385_vm4, %v1384_v13, %v3566_v10  ;;  %v1386_v21 = vsel %vm1385_vm4, %v1383_v16, %v3565_v12  ;;  %v3749_v10 = vld [vmem:[#allocation5 + $0xac] ss:$12 sps:$4 sm:$0xff]   ;;  %v4347_v16 = vld [vmem:[#allocation11 + $0x60] sm:$0xff]  }
 0x632   :  { %1832 = vmatprep.subr.bf16.mxu1 %v3749_v10  ;;  %v4339_v12 = vld [vmem:[#allocation11 + $0x30] sm:$0xff]   ;;  %v4344_v13 = vld [vmem:[#allocation11 + $0x28] sm:$0xff]  }
 0x633   :  { %v3757_v10 = vld [vmem:[#allocation5 + $0x4c] ss:$12 sps:$4 sm:$0xff]  }
 0x636   :  { %v3569_v11 = vpop.permute.xlu0 %3568 }
 0x637   :  { %v3571_v17 = vunpack.i.h.bf16 %v3569_v11  ;;  %v3570_v18 = vunpack.i.l.bf16 %v3569_v11  ;;  %v4341_v11 = vld [vmem:[#allocation11 + $0x68] sm:$0xff]  }
 0x639   :  { %v1390_v22 = vsel %vm1388_vm5, %v1387_v20, %v3571_v17  ;;  %v1389_v5 = vsel %vm1388_vm5, %v1386_v21, %v3570_v18  ;;  %v4350_v17 = vld [vmem:[#allocation11 + $0x20] sm:$0xff]   ;;  %v4353_v18 = vld [vmem:[#allocation11 + $0x58] sm:$0xff]  }
 0x63a   :  { %v1391_v24 = vpack.c.bf16 %v1390_v22, %v1389_v5  ;;  %v4356_v20 = vld [vmem:[#allocation11 + $0x18] sm:$0xff]  }
 0x63c   :  { %3400 = vmatmul.mubr.bf16.vlgmr.msra.gmra.mxu0 %v1391_v24 }
 0x63d   :  { %3174 = vmatpush3.bf16.msra.mxu0 %v3652_v8  ;;  %v3755_v8 = vld [vmem:[#allocation5 + $0x64] ss:$12 sps:$4 sm:$0xff]  }
 0x63e   :  { %3175 = vmatprep.subr.bf16.mxu0 %v3653_v9  ;;  %v3756_v9 = vld [vmem:[#allocation5 + $0x60] ss:$12 sps:$4 sm:$0xff]  }
 0x641   :  { %3176 = vmatpush3.bf16.msra.mxu0 %v4339_v12 }
 0x642   :  { %3177 = vmatprep.subr.bf16.mxu0 %v4341_v11 }
 0x645   :  { %3178 = vmatpush3.bf16.msra.mxu0 %v4344_v13 }
 0x646   :  { %3179 = vmatprep.subr.bf16.mxu0 %v4347_v16 }
 0x649   :  { %3180 = vmatpush3.bf16.msra.mxu0 %v4350_v17 }
 0x64a   :  { %3181 = vmatprep.subr.bf16.mxu0 %v4353_v18 }
 0x64d   :  { %3182 = vmatpush3.bf16.msra.mxu0 %v4356_v20 }
 0x6fc   :  { %v1478_v19 = vpop.f32.mrf.mxu0 }
 0x6fd   :  { %v1479_v14 = vadd.f32 %v1478_v19, %v4268_v26 }
 0x6fe   :  { %v3401_v28 = vpop.f32.mrf.mxu0 }
 0x6ff   :  { %v4271_v42 = vadd.f32 %v3747_v15, %v1479_v14  ;;  %v4363_v28 = vrot.slane %v4056_v45, %v259_v23 }
 0x700   :  { %v1481_v30 = vpop.f32.mrf.mxu0 }
 0x701   :  { %v1482_v31 = vadd.f32 %v1481_v30, %v4268_v26  ;;  %1487 = vadd.xlane.f32.xlu1 %v4271_v42  ;;  %v1517_v30 = vsub.s32 3, %v4048_v43 }
 0x702   :  { %v3402_v32 = vpop.f32.mrf.mxu0 }
 0x703   :  { %v4275_v35 = vadd.f32 %v3748_v33, %v1482_v31 }
 0x705   :  { %1489 = vadd.xlane.f32.xlu0 %v4275_v35 }
 0x78a   :  { %v1488_v39 = vpop.xlane.xlu1 %1487 }
 0x78b   :  { %v1491_v40 = vmul.f32 0.0078125, %v1488_v39  ;;  %v4370_v39 = vrot.slane %v4056_v45, %v1517_v30  ;;  %v3754_v45 = vld [vmem:[#allocation5 + $0x78] ss:$12 sps:$4 sm:$0xff]   ;;  %v4384_v30 = vld [vmem:[#allocation11 + $0x48] sm:$0xff]  }
 0x78d   :  { %v4285_v41 = vsub.f32 %v4271_v42, %v1491_v40 }
 0x78e   :  { %v1490_v46 = vpop.xlane.xlu0 %1489 }
 0x78f   :  { %v1492_v50 = vmul.f32 0.0078125, %v1490_v46  ;;  %v1495_v37 = vmul.f32 %v4285_v41, %v4285_v41 }
 0x791   :  { %v4290_v47 = vsub.f32 %v4275_v35, %v1492_v50  ;;  %1497 = vadd.xlane.f32.xlu0 %v1495_v37  ;;  %v3750_v37 = vld [vmem:[#allocation5 + $0xa8] ss:$12 sps:$4 sm:$0xff]  }
 0x793   :  { %v1496_v51 = vmul.f32 %v4290_v47, %v4290_v47 }
 0x795   :  { %1499 = vadd.xlane.f32.xlu0 %v1496_v51  ;;  %v3753_v51 = vld [vmem:[#allocation5 + $0x7c] ss:$12 sps:$4 sm:$0xff]  }
 0x81a   :  { %v1498_v21 = vpop.xlane.xlu0 %1497 }
 0x81b   :  { %v1501_v22 = vmul.f32 0.0078125, %v1498_v21  ;;  %v3758_v21 = vld [vmem:[#allocation5 + $0x48] ss:$12 sps:$4 sm:$0xff]  }
 0x81d   :  { %v1503_v5 = vadd.f32 1e-05, %v1501_v22  ;;  %v3759_v22 = vld [vmem:[#allocation5 + $0x34] ss:$12 sps:$4 sm:$0xff]  }
 0x81e   :  { %v1500_v24 = vpop.xlane.xlu0 %1499 }
 0x81f   :  { %3703 = vrsqrt.f32 %v1503_v5  ;;  %v1502_v25 = vmul.f32 0.0078125, %v1500_v24  ;;  %v3760_v5 = vld [vmem:[#allocation5 + $0x30] ss:$12 sps:$4 sm:$0xff]  }
 0x820   :  { %v3761_v24 = vld [vmem:[#allocation5 + $0x1c] ss:$12 sps:$4 sm:$0xff]  }
 0x821   :  { %v1504_v19 = vadd.f32 1e-05, %v1502_v25  ;;  %v3762_v25 = vld [vmem:[#allocation5 + $0x18] ss:$12 sps:$4 sm:$0xff]  }
 0x823   :  { %3705 = vrsqrt.f32 %v1504_v19  ;;  %v3763_v19 = vld [vmem:[#allocation5 + $0x4] ss:$12 sps:$4 sm:$0xff]  }
 0x82c   :  { %v3704_v14 = vpop.eup %3703 }
 0x82d   :  { %v1507_v15 = vmul.f32 %v3704_v14, %v4285_v41  ;;  %v3751_v41 = vld [vmem:[#allocation5 + $0x94] ss:$12 sps:$4 sm:$0xff]  }
 0x82e   :  { %v4378_v14 = vld [vmem:[#allocation11 + $0x50] sm:$0xff]  }
 0x82f   :  { %v1513_v33 = vmul.f32 %v4363_v28, %v1507_v15  ;;  %v4380_v15 = vld [vmem:[#allocation11 + $0x10] sm:$0xff]   ;;  %3183 = vmatprep.subr.bf16.mxu0 %v4378_v14 }
 0x830   :  { %v3706_v31 = vpop.eup %3705  ;;  %3184 = vmatpush3.bf16.msra.mxu0 %v4380_v15 }
 0x831   :  { %v1508_v32 = vmul.f32 %v3706_v31, %v4290_v47  ;;  %v1519_v46 = vadd.f32 %v4370_v39, %v1513_v33  ;;  %v3752_v47 = vld [vmem:[#allocation5 + $0x90] ss:$12 sps:$4 sm:$0xff]   ;;  %3185 = vmatprep.subr.bf16.mxu0 %v4384_v30  ;;  %v210_v33 = vld [vmem:[#allocation10] sm:$0x3] }
 0x832   :  { %v4386_v31 = vld [vmem:[#allocation11 + $0x8] sm:$0xff]  }
 0x833   :  { %v1514_v40 = vmul.f32 %v4363_v28, %v1508_v32  ;;  %v4390_v32 = vld [vmem:[#allocation11 + $0x40] sm:$0xff]  }
 0x834   :  { %3186 = vmatpush3.bf16.msra.mxu0 %v4386_v31 }
 0x835   :  { %v1520_v50 = vadd.f32 %v4370_v39, %v1514_v40  ;;  %3187 = vmatprep.subr.bf16.mxu0 %v4390_v32 }
 0x837   :  { %v1521_v23 = vpack.c.bf16 %v1520_v50, %v1519_v46  ;;  %v4398_v46 = vrot.slane %v210_v33, %v4064_v49  ;;  %v4401_v50 = vrot.slane %v210_v33, %v4051_v44  ;;  %v3764_v44 = vld [vmem:[#allocation5 + $0xb0] ss:$12 sps:$4 sm:$0xff]  }
 0x838   :  { %v3768_v33 = vld [vmem:[#allocation5 + $0x50] ss:$12 sps:$4 sm:$0xff]  }
 0x839   :  { %1646 = vmatmul.mubr.bf16.vlgmr.msra.gmra.mxu1 %v1521_v23 }
 0x83a   :  { %1833 = vmatpush1.bf16.msra.mxu1 %v3750_v37  ;;  %1864 = vmatprep.mubr.bf16.mxu1 %v4673_v27 }
 0x83b   :  { %1834 = vmatprep.subr.bf16.mxu1 %v3751_v41 }
 0x83e   :  { %1835 = vmatpush1.bf16.msra.mxu1 %v3752_v47 }
 0x83f   :  { %1836 = vmatprep.subr.bf16.mxu1 %v3753_v51 }
 0x842   :  { %1837 = vmatpush1.bf16.msra.mxu1 %v3754_v45 }
 0x843   :  { %1838 = vmatprep.subr.bf16.mxu1 %v3755_v8 }
 0x846   :  { %1839 = vmatpush1.bf16.msra.mxu1 %v3756_v9 }
 0x847   :  { %1840 = vmatprep.subr.bf16.mxu1 %v3757_v10 }
 0x84a   :  { %1841 = vmatpush1.bf16.msra.mxu1 %v3758_v21 }
 0x84b   :  { %1842 = vmatprep.subr.bf16.mxu1 %v3759_v22 }
 0x84e   :  { %1843 = vmatpush1.bf16.msra.mxu1 %v3760_v5 }
 0x84f   :  { %1844 = vmatprep.subr.bf16.mxu1 %v3761_v24  ;;  %v3765_v24 = vld [vmem:[#allocation5 + $0x98] ss:$12 sps:$4 sm:$0xff]  }
 0x852   :  { %1845 = vmatpush1.bf16.msra.mxu1 %v3762_v25  ;;  %v3766_v25 = vld [vmem:[#allocation5 + $0x80] ss:$12 sps:$4 sm:$0xff]  }
 0x853   :  { %1846 = vmatprep.subr.bf16.mxu1 %v3763_v19  ;;  %v3767_v19 = vld [vmem:[#allocation5 + $0x68] ss:$12 sps:$4 sm:$0xff]  }
 0x856   :  { %1847 = vmatpush1.bf16.msra.mxu1 %v4042_v34  ;;  %v4392_v34 = vld [vmem:[#allocation11] sm:$0xff]  }
 0x857   :  { %3423 = vmatprep.subr.bf16.mxu1 %v3945_v4  ;;  %3188 = vmatpush3.bf16.msra.mxu0 %v4392_v34 }
 0x858   :  { %3403 = vmatprep.subr.bf16.mxu0 %v3945_v4 }
 0x8f9   :  { %v1647_v40 = vpop.f32.mrf.mxu1 }
 0x8fa   :  { %v1648_v51 = vadd.f32 %v1647_v40, %v4401_v50  ;;  %v3769_v40 = vld [vmem:[#allocation5 + $0x38] ss:$12 sps:$4 sm:$0xff]  }
 0x8fb   :  { %v1649_v23 = vpop.f32.mrf.mxu1 }
 0x8fc   :  { %v1650_v41 = vadd.f32 %v1649_v23, %v4398_v46  ;;  %v1656_v22 = vmax.f32 %v1648_v51, 0.0  ;;  %v3770_v23 = vld [vmem:[#allocation5 + $0x20] ss:$12 sps:$4 sm:$0xff]   ;;  %v3772_v51 = vld [vmem:[%s4671_s7] sm:$0x3f]  ;;  %s3950_s7 = smov [#allocation13]  }
 0x8fd   :  { %v1651_v37 = vpop.f32.mrf.mxu1  ;;  %s2996_s21 = sshll.u32 %s3950_s7, 4  ;;  %s2997_s21 = int_to_ptr.vmem [resolvable:$true] %s2996_s21 }
 0x8fe   :  { %v1652_v47 = vadd.f32 %v1651_v37, %v4401_v50  ;;  %v1657_v10 = vmax.f32 %v1650_v41, 0.0  ;;  %v3771_v37 = vld [vmem:[#allocation5 + $0x8] ss:$12 sps:$4 sm:$0xff]   ;;  %v1664_v41 = vsub.s32 5, %v4048_v43  ;;  %s3903_s22 = scalar_lea.vmem %s2997_s21, 256  ;;  %p3908_p3 = scmp.lt.s32.totalorder %s2997_s21, %s2997_s21 }
 0x8ff   :  { %v1653_v45 = vpop.f32.mrf.mxu1  ;;  %p3904_p2 = scmp.ne.s32.totalorder %s2997_s21, %s3903_s22  ;;  %p3909_p4 = scmp.lt.s32.totalorder %s3903_s22, %s3903_s22 }
 0x900   :  { %v1654_v8 = vadd.f32 %v1653_v45, %v4398_v46  ;;  %v1658_v9 = vmax.f32 %v1652_v47, 0.0  ;;  %v4421_v45 = vrot.slane %v3772_v51, %v1664_v41 }
 0x901   :  { %p3910_p5 = por %p3909_p4, %p3908_p3 }
 0x902   :  { %v1659_v21 = vmax.f32 %v1654_v8, 0.0  ;;  %v1660_v5 = vpack.c.bf16 %v1658_v9, %v1656_v22 }
 0x903   :  { %p3911_p6 = pnand %p3910_p5, %p3904_p2 }
 0x904   :  { %v1661_v49 = vpack.c.bf16 %v1659_v21, %v1657_v10 }
 0x906   :  { %1794 = vmatprep.mubr.bf16.mxu0 %v1661_v49 }
 0x907   :  { %1795 = vmatmul.mubr.bf16.vlgmr.msra.gmra.mxu0 %v1660_v5 }
 0x908   :  { %3404 = vmatpush3.bf16.msra.mxu0 %v3764_v44  ;;  %3419 = vmatprep.mubr.msk.bf16.mxu0 %vm3947_vm0, %v3945_v4 }
 0x909   :  { %3405 = vmatprep.subr.bf16.mxu0 %v3945_v4 }
 0x90c   :  { %3406 = vmatpush3.bf16.msra.mxu0 %v3765_v24 }
 0x90d   :  { %3407 = vmatprep.subr.bf16.mxu0 %v3945_v4 }
 0x910   :  { %3408 = vmatpush3.bf16.msra.mxu0 %v3766_v25 }
 0x911   :  { %3409 = vmatprep.subr.bf16.mxu0 %v3945_v4 }
 0x914   :  { %3410 = vmatpush3.bf16.msra.mxu0 %v3767_v19 }
 0x915   :  { %3411 = vmatprep.subr.bf16.mxu0 %v3945_v4 }
 0x918   :  { %3412 = vmatpush3.bf16.msra.mxu0 %v3768_v33 }
 0x919   :  { %3413 = vmatprep.subr.bf16.mxu0 %v3945_v4 }
 0x91c   :  { %3414 = vmatpush3.bf16.msra.mxu0 %v3769_v40 }
 0x91d   :  { %3415 = vmatprep.subr.bf16.mxu0 %v3945_v4 }
 0x920   :  { %3416 = vmatpush3.bf16.msra.mxu0 %v3770_v23 }
 0x921   :  { %3417 = vmatprep.subr.bf16.mxu0 %v3945_v4 }
 0x924   :  { %3418 = vmatpush3.bf16.msra.mxu0 %v3771_v37 }
 0x925   :  { %3447 = vmatprep.subr.bf16.mxu0 %v3945_v4 }
 0x9c7   :  { %v3189_v47 = vpop.f32.mrf.mxu0 }
 0x9c9   :  { %v3190_v8 = vpop.f32.mrf.mxu0 }
 0x9ca   :  { %v3191_v9 = vadd.f32 %v3190_v8, %v3189_v47 }
 0x9cb   :  { %v3192_v10 = vpop.f32.mrf.mxu0 }
 0x9cc   :  { %v1797_v21 = vadd.f32 %v3191_v9, %v4421_v45 }
 0x9cd   :  { %v3193_v22 = vpop.f32.mrf.mxu0 }
 0x9ce   :  { %v3194_v49 = vadd.f32 %v3193_v22, %v3192_v10  ;;  %v4425_v5 = vadd.f32 %v1797_v21, %v4271_v42 }
 0x9d0   :  { %v1800_v44 = vadd.f32 %v3194_v49, %v4421_v45  ;;  %1805 = vadd.xlane.f32.xlu1 %v4425_v5 }
 0x9d2   :  { %v4430_v43 = vadd.f32 %v1800_v44, %v4275_v35 }
 0x9d4   :  { %1807 = vadd.xlane.f32.xlu0 %v4430_v43 }
 0xa59   :  { %v1806_v24 = vpop.xlane.xlu1 %1805 }
 0xa5a   :  { %v1809_v25 = vmul.f32 0.0078125, %v1806_v24 }
 0xa5c   :  { %v1811_v19 = vsub.f32 %v4425_v5, %v1809_v25 }
 0xa5d   :  { %v1808_v33 = vpop.xlane.xlu0 %1807 }
 0xa5e   :  { %v1810_v40 = vmul.f32 0.0078125, %v1808_v33  ;;  %v1813_v23 = vmul.f32 %v1811_v19, %v1811_v19 }
 0xa60   :  { %v1812_v37 = vsub.f32 %v4430_v43, %v1810_v40  ;;  %1815 = vadd.xlane.f32.xlu1 %v1813_v23 }
 0xa62   :  { %v1814_v42 = vmul.f32 %v1812_v37, %v1812_v37 }
 0xa64   :  { %1817 = vadd.xlane.f32.xlu0 %v1814_v42 }
 0xae9   :  { %v1816_v41 = vpop.xlane.xlu1 %1815 }
 0xaea   :  { %v1819_v47 = vmul.f32 0.0078125, %v1816_v41 }
 0xaec   :  { %v1821_v51 = vadd.f32 1e-05, %v1819_v47 }
 0xaed   :  { %v1818_v8 = vpop.xlane.xlu0 %1817 }
 0xaee   :  { %3707 = vrsqrt.f32 %v1821_v51  ;;  %v1820_v35 = vmul.f32 0.0078125, %v1818_v8 }
 0xaf0   :  { %v1822_v9 = vadd.f32 1e-05, %v1820_v35 }
 0xaf2   :  { %3709 = vrsqrt.f32 %v1822_v9 }
 0xafb   :  { %v3708_v10 = vpop.eup %3707 }
 0xafc   :  { %v1825_v21 = vmul.f32 %v3708_v10, %v1811_v19 }
 0xafe   :  { %v1827_v44 = vmul.f32 %v1825_v21, %v4061_v48 }
 0xaff   :  { %v3710_v22 = vpop.eup %3709 }
 0xb00   :  { %v1826_v49 = vmul.f32 %v3710_v22, %v1812_v37  ;;  %v1829_v25 = vadd.f32 %v1827_v44, %v4070_v53 }
 0xb02   :  { %v1828_v24 = vmul.f32 %v1826_v49, %v4061_v48 }
 0xb04   :  { %v1830_v33 = vadd.f32 %v1828_v24, %v4070_v53 }
 0xb06   :  { %v1831_v40 = vpack.c.bf16 %v1830_v33, %v1829_v25 }
 0xb08   :  { %1865 = vmatmul.mubr.bf16.vlgmr.msra.gmra.mxu1 %v1831_v40  ;;  %3420 = vmatmul.mubr.bf16.vlgmr.msra.gmra.mxu0 %v1831_v40 }
 0xb09   :  { %3425 = vmatprep.mubr.msk.bf16.mxu1 %vm3947_vm0, %v3945_v4  ;;  %3449 = vmatprep.mubr.msk.bf16.mxu0 %vm3947_vm0, %v3945_v4 }
 0xbc8   :  { %v1866_v19 = vpop.f32.mrf.mxu1  ;;  %v1909_v23 = vpop.f32.mrf.mxu0 }
 0xbc9   :  { %v1867_v41 = vadd.f32 %v1866_v19, %v4083_v59 }
 0xbca   :  { %v1868_v37 = vpop.f32.mrf.mxu1  ;;  %v3421_v42 = vpop.f32.mrf.mxu0 }
 0xbcb   :  { %v1869_v48 = vadd.f32 %v1868_v37, %v4086_v60 }
 0xbcc   :  { %v1870_v47 = vpop.f32.mrf.mxu1  ;;  %v4445_v51 = vpop.f32.mrf.mxu0 }
 0xbcd   :  { %v3119_v53 = vpack.c.bf16 %v1869_v48, %v1867_v41  ;;  %v1871_v9 = vadd.f32 %v1870_v47, %v4083_v59 }
 0xbce   :  { %v1872_v8 = vpop.f32.mrf.mxu1  ;;  %v3422_v35 = vpop.f32.mrf.mxu0 }
 0xbcf   :  { %v1873_v10 = vadd.f32 %v1872_v8, %v4086_v60  ;;  %1932 = vrot.lane.b32.xlu1 %v3119_v53, %s3948_s2  ;;  %v1944_v21 = vrot.slane %v3119_v53, 4  ;;  %v1910_v8 = vadd.f32 %v1909_v23, %v4122_v29 }
 0xbd1   :  { %v3121_v22 = vpack.c.bf16 %v1873_v10, %v1871_v9  ;;  %v1968_v49 = vsel %vm524_vm1, %v1944_v21, 0  ;;  %v4480_v10 = vpack.c.bf16 %v1910_v8, %v1910_v8 }
 0xbd2   :  { %3424 = vmatpush3.bf16.xpose.msra.mxu1 %v1968_v49 }
 0xbd3   :  { %1934 = vrot.lane.b32.xlu0 %v3121_v22, %s3948_s2  ;;  %1936 = vrot.lane.b32.xlu1 %v3119_v53, %s3941_s4  ;;  %v1945_v44 = vrot.slane %v3121_v22, 4  ;;  %v2432_v49 = vsel %vm993_vm2, %v4480_v10, 0 }
 0xbd4   :  { %3429 = vmatprep.subr.bf16.mxu1 %v3945_v4 }
 0xbd5   :  { %v2014_v59 = vsel %vm524_vm1, %v1945_v44, 0  ;;  %v1913_v44 = vadd.f32 %v4445_v51, %v4122_v29 }
 0xbd7   :  { %1942 = vrot.lane.b32.xlu0 %v3121_v22, %s3949_s19  ;;  %1938 = vrot.lane.b32.xlu1 %v3121_v22, %s3941_s4 }
 0xbd9   :  { %3426 = vmatmul.mubr.msk.bf16.vlgmr.msra.gmra.mxu1 %vm524_vm1, %v3119_v53 }
 0xbda   :  { %3430 = vmatpush3.bf16.xpose.msra.mxu1 %v2014_v59  ;;  %3431 = vmatprep.mubr.msk.bf16.mxu1 %vm3947_vm0, %v3945_v4 }
 0xbdb   :  { %1940 = vrot.lane.b32.xlu1 %v3119_v53, %s3949_s19  ;;  %3435 = vmatprep.subr.bf16.mxu1 %v3945_v4 }
 0xbe1   :  { %3432 = vmatmul.mubr.msk.bf16.vlgmr.msra.gmra.mxu1 %vm524_vm1, %v3121_v22 }
 0xbe2   :  { %3437 = vmatprep.mubr.msk.bf16.mxu1 %vm3947_vm0, %v3945_v4 }
 0xc41   :  { %v1933_v60 = vpop.permute.xlu1 %1932 }
 0xc42   :  { %v1946_v24 = vrot.slane %v1933_v60, 4 }
 0xc44   :  { %v2060_v25 = vsel %vm524_vm1, %v1946_v24, 0 }
 0xc45   :  { %v1935_v33 = vpop.permute.xlu0 %1934  ;;  %v1937_v40 = vpop.permute.xlu1 %1936  ;;  %3436 = vmatpush3.bf16.xpose.msra.mxu1 %v2060_v25 }
 0xc46   :  { %v1948_v19 = vrot.slane %v1937_v40, 4  ;;  %3441 = vmatprep.subr.bf16.mxu1 %v3945_v4  ;;  %v1947_v37 = vrot.slane %v1935_v33, 4 }
 0xc48   :  { %v2152_v42 = vsel %vm524_vm1, %v1948_v19, 0  ;;  %v2106_v48 = vsel %vm524_vm1, %v1947_v37, 0 }
 0xc49   :  { %3448 = vmatpush3.bf16.xpose.msra.mxu0 %v2152_v42  ;;  %v1939_v41 = vpop.permute.xlu1 %1938  ;;  %v1943_v22 = vpop.permute.xlu0 %1942 }
 0xc4a   :  { %3459 = vmatprep.subr.bf16.mxu0 %v3945_v4  ;;  %v1949_v35 = vrot.slane %v1939_v41, 4  ;;  %v1951_v23 = vrot.slane %v1943_v22, 4 }
 0xc4c   :  { %3438 = vmatmul.mubr.msk.bf16.vlgmr.msra.gmra.mxu1 %vm524_vm1, %v1933_v60  ;;  %v2198_v21 = vsel %vm524_vm1, %v1949_v35, 0  ;;  %v2290_v59 = vsel %vm524_vm1, %v1951_v23, 0  ;;  %v4500_v60 = vpack.c.bf16 %v1913_v44, %v1913_v44 }
 0xc4d   :  { %v1941_v47 = vpop.permute.xlu1 %1940  ;;  %3442 = vmatpush3.bf16.xpose.msra.mxu1 %v2106_v48  ;;  %3443 = vmatprep.mubr.msk.bf16.mxu1 %vm3947_vm0, %v3945_v4 }
 0xc4e   :  { %v1950_v53 = vrot.slane %v1941_v47, 4  ;;  %3453 = vmatprep.subr.bf16.mxu1 %v3945_v4  ;;  %v2478_v24 = vsel %vm993_vm2, %v4500_v60, 0 }
 0xc50   :  { %3450 = vmatmul.mubr.msk.bf16.vlgmr.msra.gmra.mxu0 %vm524_vm1, %v1937_v40  ;;  %v2244_v9 = vsel %vm524_vm1, %v1950_v53, 0 }
 0xc51   :  { %3460 = vmatpush3.bf16.xpose.msra.mxu0 %v2244_v9  ;;  %3461 = vmatprep.mubr.msk.bf16.mxu0 %vm3947_vm0, %v3945_v4 }
 0xc52   :  { %3471 = vmatprep.subr.bf16.mxu0 %v3945_v4 }
 0xc54   :  { %3444 = vmatmul.mubr.msk.bf16.vlgmr.msra.gmra.mxu1 %vm524_vm1, %v1935_v33 }
 0xc55   :  { %3454 = vmatpush3.bf16.xpose.msra.mxu1 %v2198_v21  ;;  %3455 = vmatprep.mubr.msk.bf16.mxu1 %vm3947_vm0, %v3945_v4 }
 0xc56   :  { %3465 = vmatprep.subr.bf16.mxu1 %v3945_v4 }
 0xc58   :  { %3462 = vmatmul.mubr.msk.bf16.vlgmr.msra.gmra.mxu0 %vm524_vm1, %v1941_v47 }
 0xc59   :  { %3472 = vmatpush3.bf16.msra.mxu0 %v2432_v49  ;;  %3473 = vmatprep.mubr.msk.bf16.mxu0 %vm3947_vm0, %v3945_v4 }
 0xc5a   :  { %3483 = vmatprep.subr.bf16.mxu0 %v3945_v4 }
 0xc5c   :  { %3456 = vmatmul.mubr.msk.bf16.vlgmr.msra.gmra.mxu1 %vm524_vm1, %v1939_v41 }
 0xc5d   :  { %3466 = vmatpush3.bf16.xpose.msra.mxu1 %v2290_v59  ;;  %3467 = vmatprep.mubr.msk.bf16.mxu1 %vm3947_vm0, %v3945_v4 }
 0xc5e   :  { %3477 = vmatprep.subr.bf16.mxu1 %v3945_v4 }
 0xc64   :  { %3468 = vmatmul.mubr.msk.bf16.vlgmr.msra.gmra.mxu1 %vm524_vm1, %v1943_v22 }
 0xc65   :  { %3478 = vmatpush3.bf16.msra.mxu1 %v2478_v24  ;;  %3479 = vmatprep.mubr.msk.bf16.mxu1 %vm3947_vm0, %v3945_v4 }
 0xc66   :  { %3489 = vmatprep.subr.bf16.mxu1 %v3945_v4 }
 0xc99   :  { %v2004_v29 = vpop.f32.mrf.mxu1 }
 0xc9a   :  { %v2332_v51 = vsel %vm893_vm3, %v2004_v29, -inf }
 0xc9b   :  { %2333 = vmax.xlane.f32.xlu1 %v2332_v51  ;;  %v3427_v25 = vpop.f32.mrf.mxu1 }
 0xc9d   :  { %v2007_v33 = vpop.f32.mrf.mxu1 }
 0xc9f   :  { %v3428_v40 = vpop.f32.mrf.mxu1 }
 0xca1   :  { %v2050_v19 = vpop.f32.mrf.mxu1 }
 0xca2   :  { %v2335_v37 = vsel %vm893_vm3, %v2050_v19, -inf }
 0xca3   :  { %2336 = vmax.xlane.f32.xlu0 %v2335_v37  ;;  %v3433_v42 = vpop.f32.mrf.mxu1 }
 0xca5   :  { %v2053_v41 = vpop.f32.mrf.mxu1 }
 0xca7   :  { %v3434_v48 = vpop.f32.mrf.mxu1 }
 0xd0c   :  { %v2096_v47 = vpop.f32.mrf.mxu1 }
 0xd0d   :  { %v2338_v53 = vsel %vm893_vm3, %v2096_v47, -inf }
 0xd0e   :  { %2339 = vmax.xlane.f32.xlu0 %v2338_v53  ;;  %v3439_v8 = vpop.f32.mrf.mxu1 }
 0xd10   :  { %v2099_v35 = vpop.f32.mrf.mxu1  ;;  %v2188_v9 = vpop.f32.mrf.mxu0 }
 0xd11   :  { %v2344_v21 = vsel %vm893_vm3, %v2188_v9, -inf }
 0xd12   :  { %v3451_v22 = vpop.f32.mrf.mxu0  ;;  %2345 = vmax.xlane.f32.xlu1 %v2344_v21  ;;  %v3440_v23 = vpop.f32.mrf.mxu1 }
 0xd14   :  { %v2142_v49 = vpop.f32.mrf.mxu1  ;;  %v2191_v44 = vpop.f32.mrf.mxu0 }
 0xd15   :  { %v2341_v59 = vsel %vm893_vm3, %v2142_v49, -inf }
 0xd16   :  { %v3452_v24 = vpop.f32.mrf.mxu0  ;;  %2342 = vmax.xlane.f32.xlu0 %v2341_v59  ;;  %v3445_v51 = vpop.f32.mrf.mxu1 }
 0xd18   :  { %v2145_v25 = vpop.f32.mrf.mxu1  ;;  %v4513_v33 = vpop.f32.mrf.mxu0 }
 0xd19   :  { %v2350_v40 = vsel %vm893_vm3, %v4513_v33, -inf }
 0xd1a   :  { %v3463_v37 = vpop.f32.mrf.mxu0  ;;  %2351 = vmax.xlane.f32.xlu1 %v2350_v40  ;;  %v3446_v42 = vpop.f32.mrf.mxu1 }
 0xd1c   :  { %v2234_v41 = vpop.f32.mrf.mxu1  ;;  %v2283_v48 = vpop.f32.mrf.mxu0 }
 0xd1d   :  { %v2347_v53 = vsel %vm893_vm3, %v2234_v41, -inf }
 0xd1e   :  { %v3464_v8 = vpop.f32.mrf.mxu0  ;;  %2348 = vmax.xlane.f32.xlu0 %v2347_v53  ;;  %v3457_v35 = vpop.f32.mrf.mxu1 }
 0xd20   :  { %v2237_v21 = vpop.f32.mrf.mxu1 }
 0xd22   :  { %v3458_v22 = vpop.f32.mrf.mxu1 }
 0xd24   :  { %v2326_v23 = vpop.f32.mrf.mxu1  ;;  %v2334_v42 = vpop.xlane.xlu1 %2333 }
 0xd25   :  { %v2353_v44 = vsel %vm893_vm3, %v2326_v23, -inf  ;;  %v2356_v48 = vsub.f32 %v2004_v29, %v2334_v42 }
 0xd26   :  { %2354 = vmax.xlane.f32.xlu0 %v2353_v44  ;;  %v3469_v59 = vpop.f32.mrf.mxu1 }
 0xd27   :  { %v2364_v53 = vmul.f32 1.442695, %v2356_v48 }
 0xd28   :  { %v2329_v24 = vpop.f32.mrf.mxu1 }
 0xd2a   :  { %v3470_v51 = vpop.f32.mrf.mxu1 }
 0xd2b   :  { %1952 = vrot.lane.b32.xlu1 %v4480_v10, %s3948_s2 }
 0xd2c   :  { %v2337_v25 = vpop.xlane.xlu0 %2336 }
 0xd2d   :  { %v2357_v40 = vsub.f32 %v2050_v19, %v2337_v25 }
 0xd2f   :  { %v2366_v37 = vmul.f32 1.442695, %v2357_v40 }
 0xd31   :  { %3711 = vpow2.f32 %v2366_v37 }
 0xd32   :  { %3713 = vpow2.f32 %v2364_v53 }
 0xd3e   :  { %v3712_v8 = vpop.eup %3711 }
 0xd3f   :  { %v2383_v35 = vsel %vm893_vm3, %v3712_v8, 0.0  ;;  %v3714_v21 = vpop.eup %3713 }
 0xd40   :  { %2384 = vadd.xlane.f32.xlu0 %v2383_v35  ;;  %v2380_v22 = vsel %vm893_vm3, %v3714_v21, 0.0 }
 0xd4f   :  { %2381 = vadd.xlane.f32.xlu1 %v2380_v22 }
 0xd97   :  { %v2340_v44 = vpop.xlane.xlu0 %2339 }
 0xd98   :  { %v2358_v59 = vsub.f32 %v2096_v47, %v2340_v44 }
 0xd9a   :  { %v2368_v24 = vmul.f32 1.442695, %v2358_v59 }
 0xd9b   :  { %v2346_v51 = vpop.xlane.xlu1 %2345 }
 0xd9c   :  { %3715 = vpow2.f32 %v2368_v24  ;;  %v2360_v19 = vsub.f32 %v2188_v9, %v2346_v51 }
 0xd9e   :  { %v2372_v25 = vmul.f32 1.442695, %v2360_v19 }
 0xd9f   :  { %v2343_v40 = vpop.xlane.xlu0 %2342 }
 0xda0   :  { %3717 = vpow2.f32 %v2372_v25  ;;  %v2359_v29 = vsub.f32 %v2142_v49, %v2343_v40 }
 0xda2   :  { %v2370_v37 = vmul.f32 1.442695, %v2359_v29 }
 0xda3   :  { %v2352_v59 = vpop.xlane.xlu1 %2351 }
 0xda4   :  { %3719 = vpow2.f32 %v2370_v37  ;;  %v2362_v24 = vsub.f32 %v4513_v33, %v2352_v59 }
 0xda6   :  { %v2376_v19 = vmul.f32 1.442695, %v2362_v24 }
 0xda7   :  { %v2349_v49 = vpop.xlane.xlu0 %2348  ;;  %v1953_v29 = vpop.permute.xlu1 %1952 }
 0xda8   :  { %v2361_v51 = vsub.f32 %v2234_v41, %v2349_v49  ;;  %v2524_v59 = vsel %vm993_vm2, %v1953_v29, 0 }
 0xda9   :  { %v4523_v42 = vpop.eup %3715 }
 0xdaa   :  { %v2386_v48 = vsel %vm893_vm3, %v4523_v42, 0.0  ;;  %v2374_v25 = vmul.f32 1.442695, %v2361_v51 }
 0xdab   :  { %2387 = vadd.xlane.f32.xlu1 %v2386_v48 }
 0xdad   :  { %v4527_v53 = vpop.eup %3717 }
 0xdae   :  { %v2392_v47 = vsel %vm893_vm3, %v4527_v53, 0.0 }
 0xdaf   :  { %2393 = vadd.xlane.f32.xlu1 %v2392_v47  ;;  %v2355_v22 = vpop.xlane.xlu0 %2354 }
 0xdb0   :  { %v2363_v40 = vsub.f32 %v2326_v23, %v2355_v22 }
 0xdb1   :  { %v4531_v35 = vpop.eup %3719 }
 0xdb2   :  { %v2389_v9 = vsel %vm893_vm3, %v4531_v35, 0.0  ;;  %v2378_v48 = vmul.f32 1.442695, %v2363_v40 }
 0xdb3   :  { %2390 = vadd.xlane.f32.xlu0 %v2389_v9 }
 0xdc0   :  { %1956 = vrot.lane.b32.xlu1 %v4480_v10, %s3941_s4 }
 0xdc4   :  { %1958 = vrot.lane.b32.xlu1 %v4500_v60, %s3941_s4 }
 0xdc9   :  { %1954 = vrot.lane.b32.xlu0 %v4500_v60, %s3948_s2  ;;  %v2385_v44 = vpop.xlane.xlu0 %2384 }
 0xdca   :  { %3721 = vrcp.f32 %v2385_v44 }
 0xdcb   :  { %3723 = vpow2.f32 %v2376_v19 }
 0xdcc   :  { %3725 = vpow2.f32 %v2374_v25 }
 0xdd7   :  { %v3722_v37 = vpop.eup %3721 }
 0xdd8   :  { %v2382_v47 = vpop.xlane.xlu1 %2381  ;;  %v2413_v9 = vmul.f32 %v3722_v37, %v3712_v8  ;;  %v4545_v33 = vpop.eup %3723 }
 0xdd9   :  { %3727 = vrcp.f32 %v2382_v47  ;;  %v4547_v41 = vpop.eup %3725  ;;  %v2398_v49 = vsel %vm893_vm3, %v4545_v33, 0.0 }
 0xdda   :  { %v2421_v27 = vpack.c.bf16 %v2413_v9, %v2413_v9  ;;  %3729 = vpow2.f32 %v2378_v48  ;;  %v2395_v22 = vsel %vm893_vm3, %v4547_v41, 0.0 }
 0xddc   :  { %3480 = vmatmul.mubr.msk.bf16.vlgmr.msra.gmra.mxu1 %vm893_vm3, %v2421_v27 }
 0xddd   :  { %3491 = vmatprep.mubr.msk.bf16.mxu1 %vm3947_vm0, %v3945_v4 }
 0xde6   :  { %v3728_v23 = vpop.eup %3727 }
 0xde7   :  { %v2412_v8 = vmul.f32 %v3728_v23, %v3714_v21  ;;  %v4553_v44 = vpop.eup %3729 }
 0xde8   :  { %2399 = vadd.xlane.f32.xlu1 %v2398_v49  ;;  %2396 = vadd.xlane.f32.xlu0 %v2395_v22  ;;  %v2401_v24 = vsel %vm893_vm3, %v4553_v44, 0.0 }
 0xde9   :  { %v2420_v27 = vpack.c.bf16 %v2412_v8, %v2412_v8 }
 0xdeb   :  { %3474 = vmatmul.mubr.msk.bf16.vlgmr.msra.gmra.mxu0 %vm893_vm3, %v2420_v27 }
 0xdec   :  { %3484 = vmatpush3.bf16.msra.mxu0 %v2524_v59  ;;  %2402 = vadd.xlane.f32.xlu0 %v2401_v24 }
 0xded   :  { %3485 = vmatprep.mubr.msk.bf16.mxu0 %vm3947_vm0, %v3945_v4  ;;  %3495 = vmatprep.subr.bf16.mxu0 %v3945_v4 }
 0xdf9   :  { %1960 = vrot.lane.b32.xlu1 %v4480_v10, %s3949_s19 }
 0xe02   :  { %1962 = vrot.lane.b32.xlu0 %v4500_v60, %s3949_s19 }
 0xe34   :  { %v2388_v21 = vpop.xlane.xlu1 %2387 }
 0xe35   :  { %3731 = vrcp.f32 %v2388_v21 }
 0xe38   :  { %v2394_v51 = vpop.xlane.xlu1 %2393 }
 0xe39   :  { %3733 = vrcp.f32 %v2394_v51 }
 0xe3c   :  { %v2391_v19 = vpop.xlane.xlu0 %2390  ;;  %v1957_v48 = vpop.permute.xlu1 %1956 }
 0xe3d   :  { %3735 = vrcp.f32 %v2391_v19  ;;  %v2616_v60 = vsel %vm993_vm2, %v1957_v48, 0 }
 0xe40   :  { %v1955_v25 = vpop.permute.xlu0 %1954  ;;  %v1959_v49 = vpop.permute.xlu1 %1958 }
 0xe41   :  { %v2570_v40 = vsel %vm993_vm2, %v1955_v25, 0  ;;  %v2662_v27 = vsel %vm993_vm2, %v1959_v49, 0 }
 0xe42   :  { %v3732_v29 = vpop.eup %3731  ;;  %3490 = vmatpush3.bf16.msra.mxu1 %v2570_v40 }
 0xe43   :  { %v2414_v37 = vmul.f32 %v3732_v29, %v4523_v42  ;;  %3501 = vmatprep.subr.bf16.mxu1 %v3945_v4 }
 0xe45   :  { %v2422_v10 = vpack.c.bf16 %v2414_v37, %v2414_v37 }
 0xe46   :  { %v3734_v47 = vpop.eup %3733 }
 0xe47   :  { %3486 = vmatmul.mubr.msk.bf16.vlgmr.msra.gmra.mxu0 %vm893_vm3, %v2422_v10  ;;  %v2416_v9 = vmul.f32 %v3734_v47, %v4527_v53 }
 0xe48   :  { %3496 = vmatpush3.bf16.msra.mxu0 %v2616_v60  ;;  %3497 = vmatprep.mubr.msk.bf16.mxu0 %vm3947_vm0, %v3945_v4  ;;  %v3773_v60 = vld [vmem:[#allocation7 + $0x38] sm:$0xff]  }
 0xe49   :  { %3507 = vmatprep.subr.bf16.mxu0 %v3945_v4  ;;  %v2424_v8 = vpack.c.bf16 %v2416_v9, %v2416_v9 }
 0xe4a   :  { %v3736_v23 = vpop.eup %3735 }
 0xe4b   :  { %v2415_v42 = vmul.f32 %v3736_v23, %v4531_v35  ;;  %v3775_v23 = vld [vmem:[#allocation7 + $0x28] sm:$0xff]  }
 0xe4d   :  { %v2423_v22 = vpack.c.bf16 %v2415_v42, %v2415_v42  ;;  %v3776_v42 = vld [vmem:[#allocation7 + $0x20] sm:$0xff]  }
 0xe4f   :  { %3492 = vmatmul.mubr.msk.bf16.vlgmr.msra.gmra.mxu1 %vm893_vm3, %v2423_v22  ;;  %3498 = vmatmul.mubr.msk.bf16.vlgmr.msra.gmra.mxu0 %vm893_vm3, %v2424_v8 }
 0xe50   :  { %3502 = vmatpush3.bf16.msra.mxu1 %v2662_v27  ;;  %3503 = vmatprep.mubr.msk.bf16.mxu1 %vm3947_vm0, %v3945_v4 }
 0xe51   :  { %3509 = vmatprep.mubr.msk.bf16.mxu0 %vm3947_vm0, %v3945_v4  ;;  %3513 = vmatprep.subr.bf16.mxu1 %v3945_v4 }
 0xe71   :  { %v2400_v53 = vpop.xlane.xlu1 %2399  ;;  %v2397_v35 = vpop.xlane.xlu0 %2396 }
 0xe72   :  { %3737 = vrcp.f32 %v2400_v53 }
 0xe73   :  { %3739 = vrcp.f32 %v2397_v35 }
 0xe75   :  { %v1961_v59 = vpop.permute.xlu1 %1960  ;;  %v2403_v24 = vpop.xlane.xlu0 %2402 }
 0xe76   :  { %v2708_v21 = vsel %vm993_vm2, %v1961_v59, 0  ;;  %3741 = vrcp.f32 %v2403_v24 }
 0xe77   :  { %3508 = vmatpush3.bf16.msra.mxu0 %v2708_v21 }
 0xe78   :  { %3519 = vmatprep.subr.bf16.mxu0 %v3945_v4 }
 0xe79   :  { %v1963_v29 = vpop.permute.xlu0 %1962 }
 0xe7a   :  { %v2754_v47 = vsel %vm993_vm2, %v1963_v29, 0 }
 0xe7f   :  { %v3738_v51 = vpop.eup %3737 }
 0xe80   :  { %v3740_v19 = vpop.eup %3739  ;;  %v2418_v25 = vmul.f32 %v3738_v51, %v4545_v33 }
 0xe81   :  { %v2417_v40 = vmul.f32 %v3740_v19, %v4547_v41  ;;  %v3774_v41 = vld [vmem:[#allocation7 + $0x30] sm:$0xff]  }
 0xe82   :  { %v2426_v37 = vpack.c.bf16 %v2418_v25, %v2418_v25 }
 0xe83   :  { %v2425_v48 = vpack.c.bf16 %v2417_v40, %v2417_v40  ;;  %v3742_v10 = vpop.eup %3741 }
 0xe84   :  { %3510 = vmatmul.mubr.msk.bf16.vlgmr.msra.gmra.mxu0 %vm893_vm3, %v2426_v37  ;;  %v2419_v33 = vmul.f32 %v3742_v10, %v4553_v44  ;;  %v4674_v44 = vmov 0  }
 0xe85   :  { %3504 = vmatmul.mubr.msk.bf16.vlgmr.msra.gmra.mxu1 %vm893_vm3, %v2425_v48  ;;  %3520 = vmatpush3.bf16.msra.mxu0 %v3773_v60 }
 0xe86   :  { %3514 = vmatpush3.bf16.msra.mxu1 %v2754_v47  ;;  %3515 = vmatprep.mubr.msk.bf16.mxu1 %vm3947_vm0, %v3945_v4  ;;  %v2427_v9 = vpack.c.bf16 %v2419_v33, %v2419_v33 }
 0xe87   :  { %3521 = vmatprep.subr.bf16.mxu0 %v3945_v4  ;;  %3535 = vmatprep.mubr.msk.bf16.mxu0 %vm3947_vm0, %v3945_v4 }
 0xe88   :  { %2897 = vmatprep.subr.bf16.mxu1 %v4280_v38  ;;  %v3777_v38 = vld [vmem:[#allocation7 + $0x18] sm:$0xff]  }
 0xe89   :  { %3522 = vmatpush3.bf16.msra.mxu0 %v3774_v41 }
 0xe8a   :  { %3523 = vmatprep.subr.bf16.mxu0 %v3945_v4 }
 0xe8d   :  { %3516 = vmatmul.mubr.msk.bf16.vlgmr.msra.gmra.mxu1 %vm893_vm3, %v2427_v9  ;;  %3524 = vmatpush3.bf16.msra.mxu0 %v3775_v23 }
 0xe8e   :  { %3525 = vmatprep.subr.bf16.mxu0 %v3945_v4  ;;  %2898 = vmatpush1.bf16.msra.mxu1 %v4278_v36  ;;  %v3778_v36 = vld [vmem:[#allocation7 + $0x10] sm:$0xff]  }
 0xe8f   :  { %2899 = vmatprep.subr.bf16.mxu1 %v4294_v52  ;;  %2929 = vmatprep.mubr.bf16.mxu1 %v4674_v44 }
 0xe91   :  { %3526 = vmatpush3.bf16.msra.mxu0 %v3776_v42 }
 0xe92   :  { %3527 = vmatprep.subr.bf16.mxu0 %v3945_v4  ;;  %2900 = vmatpush1.bf16.msra.mxu1 %v4296_v54  ;;  %v3779_v54 = vld [vmem:[#allocation7 + $0x8] sm:$0xff]  }
 0xe93   :  { %2901 = vmatprep.subr.bf16.mxu1 %v4300_v55 }
 0xe95   :  { %3528 = vmatpush3.bf16.msra.mxu0 %v3777_v38 }
 0xe96   :  { %3529 = vmatprep.subr.bf16.mxu0 %v3945_v4  ;;  %2902 = vmatpush1.bf16.msra.mxu1 %v4302_v56 }
 0xe97   :  { %2903 = vmatprep.subr.bf16.mxu1 %v4305_v57  ;;  %v3780_v57 = vld [vmem:[#allocation7] sm:$0xff]  }
 0xe99   :  { %3530 = vmatpush3.bf16.msra.mxu0 %v3778_v36 }
 0xe9a   :  { %3531 = vmatprep.subr.bf16.mxu0 %v3945_v4  ;;  %2904 = vmatpush1.bf16.msra.mxu1 %v4308_v58 }
 0xe9b   :  { %2905 = vmatprep.subr.bf16.mxu1 %v4311_v61 }
 0xe9c   :  { %v2514_v52 = vpop.f32.mrf.mxu1 }
 0xe9d   :  { %3532 = vmatpush3.bf16.msra.mxu0 %v3779_v54 }
 0xe9e   :  { %v3481_v55 = vpop.f32.mrf.mxu1  ;;  %3533 = vmatprep.subr.bf16.mxu0 %v3945_v4  ;;  %2906 = vmatpush1.bf16.msra.mxu1 %v4314_v63 }
 0xe9f   :  { %2907 = vmatprep.subr.bf16.mxu1 %v4317_v0 }
 0xea0   :  { %v2517_v56 = vpop.f32.mrf.mxu1 }
 0xea1   :  { %3534 = vmatpush3.bf16.msra.mxu0 %v3780_v57 }
 0xea2   :  { %v3482_v49 = vpop.f32.mrf.mxu1  ;;  %2908 = vmatpush1.bf16.msra.mxu1 %v4320_v1  ;;  %3245 = vmatprep.subr.bf16.mxu0 %v4336_v7 }
 0xea3   :  { %2909 = vmatprep.subr.bf16.mxu1 %v4323_v2 }
 0xea6   :  { %2910 = vmatpush1.bf16.msra.mxu1 %v4326_v6 }
 0xea7   :  { %2911 = vmatprep.subr.bf16.mxu1 %v4329_v62 }
 0xeaa   :  { %2912 = vmatpush1.bf16.msra.mxu1 %v4332_v3 }
 0xeab   :  { %v2468_v4 = vpop.f32.mrf.mxu0 }
 0xead   :  { %v3475_v58 = vpop.f32.mrf.mxu0 }
 0xeaf   :  { %v2471_v61 = vpop.f32.mrf.mxu0 }
 0xeb1   :  { %v3476_v63 = vpop.f32.mrf.mxu0 }
 0xf07   :  { %v2560_v0 = vpop.f32.mrf.mxu0 }
 0xf09   :  { %v3487_v22 = vpop.f32.mrf.mxu0 }
 0xf0b   :  { %v2563_v8 = vpop.f32.mrf.mxu0 }
 0xf0c   :  { %v3781_v8 = vld [vmem:[#allocation11 + $0x38] sm:$0xff]  }
 0xf0d   :  { %v3488_v27 = vpop.f32.mrf.mxu0 }
 0xf0e   :  { %v3782_v27 = vld [vmem:[#allocation11 + $0x70] sm:$0xff]  }
 0xf0f   :  { %v2606_v53 = vpop.f32.mrf.mxu1  ;;  %v2652_v1 = vpop.f32.mrf.mxu0 }
 0xf10   :  { %v3572_v35 = vpack.i.bf16 %v2606_v53, %v2560_v0 }
 0xf11   :  { %v3493_v7 = vpop.f32.mrf.mxu1  ;;  %v3499_v59 = vpop.f32.mrf.mxu0 }
 0xf12   :  { %3573 = vrot.lane.b32.xlu1 %v3572_v35, %s3949_s19 }
 0xf13   :  { %v2609_v2 = vpop.f32.mrf.mxu1  ;;  %v2655_v6 = vpop.f32.mrf.mxu0 }
 0xf15   :  { %v3494_v62 = vpop.f32.mrf.mxu1  ;;  %v3500_v24 = vpop.f32.mrf.mxu0 }
 0xf44   :  { %v2744_v3 = vpop.f32.mrf.mxu0 }
 0xf45   :  { %v2698_v21 = vpop.f32.mrf.mxu1 }
 0xf46   :  { %v3577_v51 = vpack.i.bf16 %v2698_v21, %v2652_v1  ;;  %v3511_v19 = vpop.f32.mrf.mxu0 }
 0xf47   :  { %v3505_v25 = vpop.f32.mrf.mxu1 }
 0xf48   :  { %3578 = vrot.lane.b32.xlu0 %v3577_v51, %s3941_s4  ;;  %v2747_v40 = vpop.f32.mrf.mxu0 }
 0xf49   :  { %v2701_v29 = vpop.f32.mrf.mxu1 }
 0xf4a   :  { %v3512_v37 = vpop.f32.mrf.mxu0 }
 0xf4b   :  { %v3506_v48 = vpop.f32.mrf.mxu1 }
 0xf4d   :  { %v2790_v10 = vpop.f32.mrf.mxu1 }
 0xf4e   :  { %v3582_v47 = vpack.i.bf16 %v2790_v10, %v2744_v3 }
 0xf4f   :  { %v3517_v60 = vpop.f32.mrf.mxu1 }
 0xf50   :  { %3583 = vrot.lane.b32.xlu1 %v3582_v47, %s3948_s2 }
 0xf51   :  { %v2793_v33 = vpop.f32.mrf.mxu1 }
 0xf53   :  { %v3518_v41 = vpop.f32.mrf.mxu1 }
 0xf84   :  { %v3574_v9 = vpop.permute.xlu1 %3573 }
 0xf85   :  { %v3576_v44 = vunpack.i.h.bf16 %v3574_v9  ;;  %v3575_v42 = vunpack.i.l.bf16 %v3574_v9 }
 0xf87   :  { %v2821_v55 = vsel %vm524_vm1, %v2514_v52, %v3576_v44  ;;  %v2820_v56 = vsel %vm524_vm1, %v2468_v4, %v3575_v42 }
 0xfba   :  { %v3579_v23 = vpop.permute.xlu0 %3578 }
 0xfbb   :  { %v3581_v38 = vunpack.i.h.bf16 %v3579_v23  ;;  %v3580_v36 = vunpack.i.l.bf16 %v3579_v23 }
 0xfbd   :  { %v2823_v58 = vsel %vm1385_vm4, %v2821_v55, %v3581_v38  ;;  %v2822_v61 = vsel %vm1385_vm4, %v2820_v56, %v3580_v36 }
 0xfc2   :  { %v3584_v54 = vpop.permute.xlu1 %3583 }
 0xfc3   :  { %v3586_v57 = vunpack.i.h.bf16 %v3584_v54  ;;  %v3585_v49 = vunpack.i.l.bf16 %v3584_v54 }
 0xfc5   :  { %v2825_v63 = vsel %vm1388_vm5, %v2823_v58, %v3586_v57  ;;  %v2824_v0 = vsel %vm1388_vm5, %v2822_v61, %v3585_v49 }
 0xfc6   :  { %v2826_v22 = vpack.c.bf16 %v2825_v63, %v2824_v0 }
 0xfc8   :  { %3536 = vmatmul.mubr.bf16.vlgmr.msra.gmra.mxu0 %v2826_v22 }
 0xfc9   :  { %3246 = vmatpush3.bf16.msra.mxu0 %v3781_v8 }
 0xfca   :  { %3247 = vmatprep.subr.bf16.mxu0 %v3782_v27 }
 0xfcd   :  { %3248 = vmatpush3.bf16.msra.mxu0 %v4339_v12 }
 0xfce   :  { %3249 = vmatprep.subr.bf16.mxu0 %v4341_v11 }
 0xfd1   :  { %3250 = vmatpush3.bf16.msra.mxu0 %v4344_v13 }
 0xfd2   :  { %3251 = vmatprep.subr.bf16.mxu0 %v4347_v16 }
 0xfd5   :  { %3252 = vmatpush3.bf16.msra.mxu0 %v4350_v17 }
 0xfd6   :  { %3253 = vmatprep.subr.bf16.mxu0 %v4353_v18 }
 0xfd9   :  { %3254 = vmatpush3.bf16.msra.mxu0 %v4356_v20 }
 0xfda   :  { %3255 = vmatprep.subr.bf16.mxu0 %v4378_v14 }
 0xfdd   :  { %3256 = vmatpush3.bf16.msra.mxu0 %v4380_v15 }
 0xfde   :  { %3257 = vmatprep.subr.bf16.mxu0 %v4384_v30 }
 0xfe1   :  { %3258 = vmatpush3.bf16.msra.mxu0 %v4386_v31 }
 0xfe2   :  { %3259 = vmatprep.subr.bf16.mxu0 %v4390_v32 }
 0xfe5   :  { %3260 = vmatpush3.bf16.msra.mxu0 %v4392_v34 }
0x1088   :  { %v2861_v12 = vpop.f32.mrf.mxu0 }
0x1089   :  { %v2862_v11 = vadd.f32 %v2861_v12, %v4268_v26 }
0x108a   :  { %v3537_v13 = vpop.f32.mrf.mxu0 }
0x108b   :  { %v2868_v16 = vadd.f32 %v2862_v11, %v4425_v5 }
0x108c   :  { %v2864_v17 = vpop.f32.mrf.mxu0 }
0x108d   :  { %v2865_v18 = vadd.f32 %v2864_v17, %v4268_v26  ;;  %2870 = vadd.xlane.f32.xlu0 %v2868_v16 }
0x108e   :  { %v3538_v20 = vpop.f32.mrf.mxu0 }
0x108f   :  { %v2869_v14 = vadd.f32 %v2865_v18, %v4430_v43 }
0x1091   :  { %2872 = vadd.xlane.f32.xlu1 %v2869_v14 }
0x1116   :  { %v2871_v15 = vpop.xlane.xlu0 %2870 }
0x1117   :  { %v2874_v30 = vmul.f32 0.0078125, %v2871_v15 }
0x1119   :  { %v2876_v31 = vsub.f32 %v2868_v16, %v2874_v30 }
0x111a   :  { %v2873_v32 = vpop.xlane.xlu1 %2872 }
0x111b   :  { %v2875_v52 = vmul.f32 0.0078125, %v2873_v32  ;;  %v2878_v34 = vmul.f32 %v2876_v31, %v2876_v31 }
0x111d   :  { %v2877_v4 = vsub.f32 %v2869_v14, %v2875_v52  ;;  %2880 = vadd.xlane.f32.xlu0 %v2878_v34 }
0x111f   :  { %v2879_v53 = vmul.f32 %v2877_v4, %v2877_v4 }
0x1121   :  { %2882 = vadd.xlane.f32.xlu0 %v2879_v53 }
0x11a6   :  { %v2881_v1 = vpop.xlane.xlu0 %2880 }
0x11a7   :  { %v2884_v5 = vmul.f32 0.0078125, %v2881_v1 }
0x11a9   :  { %v2886_v35 = vadd.f32 1e-05, %v2884_v5 }
0x11aa   :  { %v2883_v7 = vpop.xlane.xlu0 %2882 }
0x11ab   :  { %3743 = vrsqrt.f32 %v2886_v35  ;;  %v2885_v26 = vmul.f32 0.0078125, %v2883_v7 }
0x11ad   :  { %v2887_v59 = vadd.f32 1e-05, %v2885_v26 }
0x11af   :  { %3745 = vrsqrt.f32 %v2887_v59 }
0x11b8   :  { %v3744_v43 = vpop.eup %3743 }
0x11b9   :  { %v2890_v2 = vmul.f32 %v3744_v43, %v2876_v31 }
0x11bb   :  { %v2892_v24 = vmul.f32 %v2890_v2, %v4363_v28 }
0x11bc   :  { %v3746_v6 = vpop.eup %3745 }
0x11bd   :  { %v2891_v62 = vmul.f32 %v3746_v6, %v2877_v4  ;;  %v2894_v21 = vadd.f32 %v2892_v24, %v4370_v39 }
0x11bf   :  { %v2893_v3 = vmul.f32 %v2891_v62, %v4363_v28 }
0x11c1   :  { %v2895_v51 = vadd.f32 %v2893_v3, %v4370_v39 }
0x11c3   :  { %v2896_v19 = vpack.c.bf16 %v2895_v51, %v2894_v21 }
0x11c5   :  { %2930 = vmatmul.mubr.bf16.vlgmr.msra.gmra.mxu1 %v2896_v19 }
0x1285   :  { %v2931_v25 = vpop.f32.mrf.mxu1 }
0x1286   :  { %v2932_v10 = vadd.f32 %v2931_v25, %v4401_v50 }
0x1287   :  { %v2933_v40 = vpop.f32.mrf.mxu1 }
0x1288   :  { %v2934_v37 = vadd.f32 %v2933_v40, %v4398_v46  ;;  %v2940_v9 = vmax.f32 %v2932_v10, 0.0 }
0x1289   :  { %v2935_v29 = vpop.f32.mrf.mxu1 }
0x128a   :  { %v2936_v48 = vadd.f32 %v2935_v29, %v4401_v50  ;;  %v2941_v28 = vmax.f32 %v2934_v37, 0.0 }
0x128b   :  { %v2937_v47 = vpop.f32.mrf.mxu1 }
0x128c   :  { %v2938_v60 = vadd.f32 %v2937_v47, %v4398_v46  ;;  %v2942_v33 = vmax.f32 %v2936_v48, 0.0 }
0x128e   :  { %v2943_v41 = vmax.f32 %v2938_v60, 0.0  ;;  %v2944_v39 = vpack.c.bf16 %v2942_v33, %v2940_v9 }
0x1290   :  { %v2945_v23 = vpack.c.bf16 %v2943_v41, %v2941_v28 }
0x1292   :  { %2978 = vmatprep.mubr.bf16.mxu0 %v2945_v23 }
0x1293   :  { %2979 = vmatmul.mubr.bf16.vlgmr.msra.gmra.mxu0 %v2944_v39 }
0x1353   :  { %v3261_v44 = vpop.f32.mrf.mxu0 }
0x1355   :  { %v3262_v42 = vpop.f32.mrf.mxu0 }
0x1356   :  { %v3263_v38 = vadd.f32 %v3262_v42, %v3261_v44 }
0x1357   :  { %v3264_v36 = vpop.f32.mrf.mxu0 }
0x1358   :  { %v2981_v54 = vadd.f32 %v3263_v38, %v4421_v45 }
0x1359   :  { %v3265_v55 = vpop.f32.mrf.mxu0 }
0x135a   :  { %v2987_v56 = vadd.f32 %v2981_v54, %v2868_v16  ;;  %v3266_v50 = vadd.f32 %v3265_v55, %v3264_v36 }
0x135c   :  { %2989 = vst [vmem:[#allocation13] sm:$0xff] %v2987_v56  ;;  %v2984_v46 = vadd.f32 %v3266_v50, %v4421_v45 }
0x135e   :  { %v2988_v57 = vadd.f32 %v2984_v46, %v2869_v14 }
0x1360   :  { %2990 = vst [vmem:[#allocation13 + $0x8] sm:$0xff] %v2988_v57 }
0x1361   :  { %3914 = shalt.err (!%p3911_p6)
}
0x1362   :  { %3002 = dma.vmem_to_hbm [thread:$0]  %s2997_s21, 256, %s4672_s8, [#allocation4], %s3938_s17, %s3938_s17, %s3939_s18  }
0x1363   :  { %3931 = dma.done.wait [#allocation4], 256  }
0x1364   :  { %3932 = vsyncadd [#allocation4], 4294967040 }
0x1365   :  { %3006 = vsyncpa [#allocation3], 1 }
0x1366   :  { %3007 = vsyncpa [#allocation6], 1 }
0x1367   :  { %3008 = vsyncpa [#allocation9], 1 }
0x1368   :  { %3009 = vsyncpa [#allocation12], 1 }
0x1369   :  { %3010 = vsyncpa [#allocation4], 1 }

</bundles_post_ra>
